<compile_context>
chip_gen: v6e
topology: v6e:2x2x1
jax: 0.10.0
libtpu: 0.0.40
codegen_flags: <defaults>
</compile_context>

<pallas_src>
import jax
import jax.numpy as jnp
import numpy as np
from jax import lax
from jax.experimental import pallas as pl
from jax.experimental.pallas import tpu as pltpu


# ----------------------------------- fused Pallas kernel -----------------------------------
def _make_tfc_kernel(num_layers, kH, kW, F_pad, C_in, G, C_all,
                     NP0, NP_ALLOC, M_SPAN, K_CENTER):
    """Builds the fused TFC kernel body.

    Slab layout (VMEM scratch (C_all, NP_ALLOC), channel-major, padded spatial flattened on
    lanes with row stride F_pad):
        channels [0, C_in)                    : zero-padded input x
        channels [C_in + i*G, C_in + (i+1)*G) : layer-i output (dense connections)
        channel  C_all - 1                    : constant 1.0 (carries folded conv/BN bias)
    Conv tap (dt, df) = contiguous lane window [dt*F_pad + df, dt*F_pad + df + M_SPAN).
    """

    def kernel(x_ref, w_ref, mask_ref, o_ref, feat_ref):
        # x_ref    : (1, C_in, NP0)        spatially zero-padded input, flattened on lanes
        # w_ref    : (L, kH*kW, G, C_all)  packed weights (BN scale + bias folded, slab order)
        # mask_ref : (1, M_SPAN)           1.0 where column m satisfies (m % F_pad) < F
        # o_ref    : (1, G, M_SPAN)        last layer output (valid columns sliced in wrapper)
        # feat_ref : VMEM scratch (C_all, NP_ALLOC) -- dense-block feature slab
        feat_ref[...] = jnp.zeros_like(feat_ref)                      # future slots + pad ring
        feat_ref[pl.ds(0, C_in), pl.ds(0, NP0)] = x_ref[0]            # real input channels only
        feat_ref[pl.ds(C_all - 1, 1), :] = jnp.ones((1, NP_ALLOC), jnp.float32)  # bias channel
        mask = mask_ref[...]                                          # (1, M_SPAN)

        for i in range(num_layers):                   # static unroll over layers
            acc = jnp.zeros((G, M_SPAN), jnp.float32)
            for dt in range(kH):                      # static unroll over conv taps
                for df in range(kW):
                    tap = feat_ref[:, pl.ds(dt * F_pad + df, M_SPAN)]   # (C_all, M_SPAN)
                    acc = acc + jnp.dot(w_ref[i, dt * kW + df], tap,
                                        preferred_element_type=jnp.float32)
            y = jnp.maximum(acc, 0.0) * mask          # ReLU; zero the pad-ring columns
            if i + 1 < num_layers:
                # dense connection: write this layer's output into its channel slot, re-centred
                # on the padded grid (masked zeros re-create the 'same' conv zero padding).
                feat_ref[pl.ds(C_in + i * G, G), pl.ds(K_CENTER, M_SPAN)] = y
            else:
                o_ref[0] = y.astype(o_ref.dtype)

    return kernel


def tfc_forward(x_nchw, packed_params, kt, kf):
    """Fused TFC forward.  x_nchw: [B, in_channels, T, F] -> [B, gr, T, F]."""
    weights, in_channels = packed_params
    num_layers, KK, G, C_all = weights.shape
    # PyTorch quirk mirrored exactly: kernel_size=(kf, kt) -> (kH, kW) = (kf, kt) applied to
    # (T, F); padding=(kt//2, kf//2) -> (pad_T, pad_F).
    kH, kW = kf, kt
    assert KK == kH * kW
    pad_t, pad_f = kt // 2, kf // 2
    B, C_in, T, F = x_nchw.shape
    assert C_in == in_channels
    T_pad, F_pad = T + 2 * pad_t, F + 2 * pad_f
    # torch.cat along channels requires the conv output spatial dims to equal the input's.
    assert (T_pad - kH + 1, F_pad - kW + 1) == (T, F), "TFC dense concat requires 'same' convs"

    NP0 = T_pad * F_pad                  # flattened padded spatial grid
    NP_ALLOC = (T_pad + 1) * F_pad       # + one guard row so every tap window stays in bounds
    M_SPAN = T * F_pad                   # matmul N dim; valid columns are m = t*F_pad + f, f<F
    K_CENTER = pad_t * F_pad + pad_f     # writeback offset re-centering output on padded grid

    x = x_nchw.astype(jnp.float32)
    x_pad = jnp.pad(x, ((0, 0), (0, 0), (pad_t, pad_t), (pad_f, pad_f)))
    x_flat = x_pad.reshape(B, C_in, NP0)

    # lane mask of valid output columns, built host-side once (avoids in-kernel int div/mod)
    mask = jnp.asarray((np.arange(M_SPAN) % F_pad < F).astype(np.float32)[None, :])

    kernel = _make_tfc_kernel(num_layers, kH, kW, F_pad, C_in, G, C_all,
                              NP0, NP_ALLOC, M_SPAN, K_CENTER)
    out_flat = pl.pallas_call(
        kernel,
        out_shape=jax.ShapeDtypeStruct((B, G, M_SPAN), x_nchw.dtype),
        grid_spec=pltpu.PrefetchScalarGridSpec(
            num_scalar_prefetch=0,
            grid=(B,),
            in_specs=[
                pl.BlockSpec((1, C_in, NP0), lambda b: (b, 0, 0)),
                pl.BlockSpec((num_layers, KK, G, C_all), lambda b: (0, 0, 0, 0)),
                pl.BlockSpec((1, M_SPAN), lambda b: (0, 0)),
            ],
            out_specs=pl.BlockSpec((1, G, M_SPAN), lambda b: (b, 0, 0)),
            scratch_shapes=[pltpu.VMEM((C_all, NP_ALLOC), jnp.float32)],
        ),
        compiler_params=pltpu.CompilerParams(dimension_semantics=("parallel",)),
    )(x_flat, weights, mask)

    # (B, G, T*F_pad) -> (B, G, T, F): free reshape + column slice; no transpose needed.
    return out_flat.reshape(B, G, T, F_pad)[:, :, :, :F]


# ------------------------- pure-JAX reference (NCHW, like PyTorch) -------------------------
def tfc_reference(x_nchw, params_oihw, kt, kf):
    pad_t, pad_f = kt // 2, kf // 2
    x = x_nchw.astype(jnp.float32)
    out = None
    for (w_oihw, scale, bias) in params_oihw:
        y = lax.conv_general_dilated(
            x, w_oihw, window_strides=(1, 1),
            padding=[(pad_t, pad_t), (pad_f, pad_f)],
            dimension_numbers=("NCHW", "OIHW", "NCHW"))
        y = y * scale[None, :, None, None] + bias[None, :, None, None]
        out = jnp.maximum(y, 0.0)
        x = jnp.concatenate([out, x], axis=1)     # torch.cat((x_, x), 1): new features first
    return out


# --------------------------------- parameter construction ----------------------------------
def init_params(key, in_channels, num_layers, gr, kt, kf):
    """Deterministic synthetic params in PyTorch layout (OIHW conv weight, folded BN)."""
    kH, kW = kf, kt
    eps = 1e-5
    params_oihw = []
    c = in_channels
    for _ in range(num_layers):
        key, k1, k2, k3, k4, k5, k6 = jax.random.split(key, 7)
        w = 0.1 * jax.random.normal(k1, (gr, c, kH, kW), jnp.float32)      # Conv2d weight
        conv_b = 0.1 * jax.random.normal(k2, (gr,), jnp.float32)           # Conv2d bias
        gamma = 1.0 + 0.1 * jax.random.normal(k3, (gr,), jnp.float32)      # BN weight
        beta = 0.1 * jax.random.normal(k4, (gr,), jnp.float32)             # BN bias
        mean = 0.1 * jax.random.normal(k5, (gr,), jnp.float32)             # BN running_mean
        var = jax.random.uniform(k6, (gr,), jnp.float32, minval=0.5, maxval=1.5)
        scale = gamma / jnp.sqrt(var + eps)
        bias = (conv_b - mean) * scale + beta
        params_oihw.append((w, scale, bias))
        c += gr
    return params_oihw


def pack_params(params_oihw, in_channels, num_layers, gr):
    """Re-layout PyTorch-convention params for the fused Pallas kernel.

    Slab channel order is [x | out_0 | ... | out_{L-2} | ones]; PyTorch feeds layer i with
    cat(out_{i-1}, ..., out_0, x), so permute each weight's input-channel axis to slab order,
    fold the BN scale into the weights, fold conv-bias + BN-shift into the ones-channel weight
    of tap 0, and zero-pad to C_all channels so all layers pack into one (L, kH*kW, gr, C_all)
    array whose (gr, C_all) slices are the matmul LHS of the transposed compute.
    """
    kH, kW = params_oihw[0][0].shape[2], params_oihw[0][0].shape[3]
    C_feat = in_channels + max(num_layers - 1, 0) * gr
    C_all = C_feat + 1                                    # + constant-ones (bias) channel
    KK = kH * kW
    W = np.zeros((num_layers, KK, gr, C_all), np.float32)
    for i, (w_oihw, scale, bias) in enumerate(params_oihw):
        C_i = in_channels + i * gr
        perm = np.zeros((C_i,), np.int64)                 # slab channel -> PyTorch channel
        perm[:in_channels] = i * gr + np.arange(in_channels)            # x_orig block
        for k in range(i):                                              # out_k block
            perm[in_channels + k * gr: in_channels + (k + 1) * gr] = \
                (i - 1 - k) * gr + np.arange(gr)
        w = np.asarray(w_oihw) * np.asarray(scale)[:, None, None, None]  # fold BN scale
        w_slab = np.transpose(w[:, perm, :, :], (2, 3, 0, 1))            # (kH, kW, gr, C_i)
        W[i, :, :, :C_i] = w_slab.reshape(KK, gr, C_i)
        W[i, 0, :, C_feat] = np.asarray(bias)             # folded bias via the ones channel
    return jnp.asarray(W), in_channels


# -------------------------------------------- test -----------------------------------------
def _run_case(key, B, C_in, T, F, num_layers, gr, kt, kf):
    key, kx = jax.random.split(key)
    x = jax.random.normal(kx, (B, C_in, T, F), jnp.float32)   # NCHW, like PyTorch
    params_oihw = init_params(key, C_in, num_layers, gr, kt, kf)
    packed = pack_params(params_oihw, C_in, num_layers, gr)

    out = jax.block_until_ready(tfc_forward(x, packed, kt, kf))
    ref = jax.block_until_ready(tfc_reference(x, params_oihw, kt, kf))

    assert out.shape == (B, gr, T, F), out.shape
    err = float(jnp.max(jnp.abs(out - ref)))
    assert jnp.allclose(out, ref, atol=1e-4, rtol=1e-4), err
    return key


if __name__ == "__main__":
    key = jax.random.PRNGKey(0)
    # TFC(in_channels=4, num_layers=3, gr=8, kt=3, kf=3, activation=nn.ReLU)
    key = _run_case(key, B=2, C_in=4, T=16, F=16, num_layers=3, gr=8, kt=3, kf=3)
    # second config: different shapes / kernel size / growth rate
    key = _run_case(key, B=2, C_in=3, T=8, F=24, num_layers=2, gr=16, kt=5, kf=5)
    print("KERNEL_OK")
</pallas_src>

<mosaic_0001>
module attributes {stable_mosaic.version = 11 : i64} {
  func.func @kernel(%arg0: i32, %arg1: memref<1x4x324xf32, #tpu.memory_space<vmem>>, %arg2: memref<3x9x8x21xf32, #tpu.memory_space<vmem>>, %arg3: memref<1x288xf32, #tpu.memory_space<vmem>>, %arg4: memref<1x8x288xf32, #tpu.memory_space<vmem>>, %arg5: memref<21x342xf32, #tpu.memory_space<vmem>>) attributes {dimension_semantics = [#tpu.dimension_semantics<parallel>], iteration_bounds = array<i64: 2>, scalar_prefetch = 0 : i64, scratch_operands = 1 : i64, tpu.core_type = #tpu.core_type<tc>, window_params = [{transform_indices = @transform_0, window_bounds = array<i64: 1, 4, 324>}, {pipeline_mode = #tpu.pipeline_mode<synchronous>, transform_indices = @transform_1, window_bounds = array<i64: 3, 9, 8, 21>}, {pipeline_mode = #tpu.pipeline_mode<synchronous>, transform_indices = @transform_2, window_bounds = array<i64: 1, 288>}, {transform_indices = @transform_3, window_bounds = array<i64: 1, 8, 288>}]} {
    %cst = arith.constant 0.000000e+00 : f32
    %0 = vector.broadcast %cst : f32 to vector<21x342xf32>
    %c0 = arith.constant 0 : index
    %c0_0 = arith.constant 0 : index
    %1 = vector.load %arg5[%c0, %c0_0] : memref<21x342xf32, #tpu.memory_space<vmem>>, vector<21x342xf32>
    tpu.vector_store %arg5[%c0, %c0_0], %0 {strides = array<i32>} : memref<21x342xf32, #tpu.memory_space<vmem>>, vector<21x342xf32>,
    %c0_1 = arith.constant 0 : index
    %c0_2 = arith.constant 0 : index
    %c0_3 = arith.constant 0 : index
    %2 = vector.load %arg1[%c0_1, %c0_2, %c0_3] : memref<1x4x324xf32, #tpu.memory_space<vmem>>, vector<1x4x324xf32>
    %3 = vector.shape_cast %2 : vector<1x4x324xf32> to vector<4x324xf32>
    %c0_4 = arith.constant 0 : index
    %c0_5 = arith.constant 0 : index
    %4 = vector.load %arg5[%c0_4, %c0_5] : memref<21x342xf32, #tpu.memory_space<vmem>>, vector<4x324xf32>
    tpu.vector_store %arg5[%c0_4, %c0_5], %3 {strides = array<i32>} : memref<21x342xf32, #tpu.memory_space<vmem>>, vector<4x324xf32>,
    %cst_6 = arith.constant 1.000000e+00 : f32
    %5 = vector.broadcast %cst_6 : f32 to vector<1x342xf32>
    %c20 = arith.constant 20 : index
    %c0_7 = arith.constant 0 : index
    %6 = vector.load %arg5[%c20, %c0_7] : memref<21x342xf32, #tpu.memory_space<vmem>>, vector<1x342xf32>
    tpu.vector_store %arg5[%c20, %c0_7], %5 {strides = array<i32>} : memref<21x342xf32, #tpu.memory_space<vmem>>, vector<1x342xf32>,
    %c0_8 = arith.constant 0 : index
    %c0_9 = arith.constant 0 : index
    %7 = vector.load %arg3[%c0_8, %c0_9] : memref<1x288xf32, #tpu.memory_space<vmem>>, vector<1x288xf32>
    %cst_10 = arith.constant 0.000000e+00 : f32
    %8 = vector.broadcast %cst_10 : f32 to vector<8x288xf32>
    %c0_11 = arith.constant 0 : index
    %c0_12 = arith.constant 0 : index
    %9 = vector.load %arg5[%c0_11, %c0_12] : memref<21x342xf32, #tpu.memory_space<vmem>>, vector<21x288xf32>
    %c0_13 = arith.constant 0 : index
    %c0_14 = arith.constant 0 : index
    %c0_15 = arith.constant 0 : index
    %c0_16 = arith.constant 0 : index
    %10 = vector.load %arg2[%c0_13, %c0_14, %c0_15, %c0_16] : memref<3x9x8x21xf32, #tpu.memory_space<vmem>>, vector<1x1x8x21xf32>
    %11 = vector.shape_cast %10 : vector<1x1x8x21xf32> to vector<8x21xf32>
    %cst_17 = arith.constant dense<0.000000e+00> : vector<8x288xf32>
    %12 = tpu.matmul %11, %9, %cst_17 {dimension_numbers = #tpu.dot_dimension_numbers<[1], [0], [0], [1], [0, 0, 1, 1], [], []>} : vector<8x21xf32>, vector<21x288xf32>, vector<8x288xf32> -> vector<8x288xf32>
    %13 = arith.addf %8, %12 : vector<8x288xf32>
    %c0_18 = arith.constant 0 : index
    %c1 = arith.constant 1 : index
    %14 = vector.load %arg5[%c0_18, %c1] : memref<21x342xf32, #tpu.memory_space<vmem>>, vector<21x288xf32>
    %c0_19 = arith.constant 0 : index
    %c1_20 = arith.constant 1 : index
    %c0_21 = arith.constant 0 : index
    %c0_22 = arith.constant 0 : index
    %15 = vector.load %arg2[%c0_19, %c1_20, %c0_21, %c0_22] : memref<3x9x8x21xf32, #tpu.memory_space<vmem>>, vector<1x1x8x21xf32>
    %16 = vector.shape_cast %15 : vector<1x1x8x21xf32> to vector<8x21xf32>
    %cst_23 = arith.constant dense<0.000000e+00> : vector<8x288xf32>
    %17 = tpu.matmul %16, %14, %cst_23 {dimension_numbers = #tpu.dot_dimension_numbers<[1], [0], [0], [1], [0, 0, 1, 1], [], []>} : vector<8x21xf32>, vector<21x288xf32>, vector<8x288xf32> -> vector<8x288xf32>
    %18 = arith.addf %13, %17 : vector<8x288xf32>
    %c0_24 = arith.constant 0 : index
    %c2 = arith.constant 2 : index
    %19 = vector.load %arg5[%c0_24, %c2] : memref<21x342xf32, #tpu.memory_space<vmem>>, vector<21x288xf32>
    %c0_25 = arith.constant 0 : index
    %c2_26 = arith.constant 2 : index
    %c0_27 = arith.constant 0 : index
    %c0_28 = arith.constant 0 : index
    %20 = vector.load %arg2[%c0_25, %c2_26, %c0_27, %c0_28] : memref<3x9x8x21xf32, #tpu.memory_space<vmem>>, vector<1x1x8x21xf32>
    %21 = vector.shape_cast %20 : vector<1x1x8x21xf32> to vector<8x21xf32>
    %cst_29 = arith.constant dense<0.000000e+00> : vector<8x288xf32>
    %22 = tpu.matmul %21, %19, %cst_29 {dimension_numbers = #tpu.dot_dimension_numbers<[1], [0], [0], [1], [0, 0, 1, 1], [], []>} : vector<8x21xf32>, vector<21x288xf32>, vector<8x288xf32> -> vector<8x288xf32>
    %23 = arith.addf %18, %22 : vector<8x288xf32>
    %c0_30 = arith.constant 0 : index
    %c18 = arith.constant 18 : index
    %24 = vector.load %arg5[%c0_30, %c18] : memref<21x342xf32, #tpu.memory_space<vmem>>, vector<21x288xf32>
    %c0_31 = arith.constant 0 : index
    %c3 = arith.constant 3 : index
    %c0_32 = arith.constant 0 : index
    %c0_33 = arith.constant 0 : index
    %25 = vector.load %arg2[%c0_31, %c3, %c0_32, %c0_33] : memref<3x9x8x21xf32, #tpu.memory_space<vmem>>, vector<1x1x8x21xf32>
    %26 = vector.shape_cast %25 : vector<1x1x8x21xf32> to vector<8x21xf32>
    %cst_34 = arith.constant dense<0.000000e+00> : vector<8x288xf32>
    %27 = tpu.matmul %26, %24, %cst_34 {dimension_numbers = #tpu.dot_dimension_numbers<[1], [0], [0], [1], [0, 0, 1, 1], [], []>} : vector<8x21xf32>, vector<21x288xf32>, vector<8x288xf32> -> vector<8x288xf32>
    %28 = arith.addf %23, %27 : vector<8x288xf32>
    %c0_35 = arith.constant 0 : index
    %c19 = arith.constant 19 : index
    %29 = vector.load %arg5[%c0_35, %c19] : memref<21x342xf32, #tpu.memory_space<vmem>>, vector<21x288xf32>
    %c0_36 = arith.constant 0 : index
    %c4 = arith.constant 4 : index
    %c0_37 = arith.constant 0 : index
    %c0_38 = arith.constant 0 : index
    %30 = vector.load %arg2[%c0_36, %c4, %c0_37, %c0_38] : memref<3x9x8x21xf32, #tpu.memory_space<vmem>>, vector<1x1x8x21xf32>
    %31 = vector.shape_cast %30 : vector<1x1x8x21xf32> to vector<8x21xf32>
    %cst_39 = arith.constant dense<0.000000e+00> : vector<8x288xf32>
    %32 = tpu.matmul %31, %29, %cst_39 {dimension_numbers = #tpu.dot_dimension_numbers<[1], [0], [0], [1], [0, 0, 1, 1], [], []>} : vector<8x21xf32>, vector<21x288xf32>, vector<8x288xf32> -> vector<8x288xf32>
    %33 = arith.addf %28, %32 : vector<8x288xf32>
    %c0_40 = arith.constant 0 : index
    %c20_41 = arith.constant 20 : index
    %34 = vector.load %arg5[%c0_40, %c20_41] : memref<21x342xf32, #tpu.memory_space<vmem>>, vector<21x288xf32>
    %c0_42 = arith.constant 0 : index
    %c5 = arith.constant 5 : index
    %c0_43 = arith.constant 0 : index
    %c0_44 = arith.constant 0 : index
    %35 = vector.load %arg2[%c0_42, %c5, %c0_43, %c0_44] : memref<3x9x8x21xf32, #tpu.memory_space<vmem>>, vector<1x1x8x21xf32>
    %36 = vector.shape_cast %35 : vector<1x1x8x21xf32> to vector<8x21xf32>
    %cst_45 = arith.constant dense<0.000000e+00> : vector<8x288xf32>
    %37 = tpu.matmul %36, %34, %cst_45 {dimension_numbers = #tpu.dot_dimension_numbers<[1], [0], [0], [1], [0, 0, 1, 1], [], []>} : vector<8x21xf32>, vector<21x288xf32>, vector<8x288xf32> -> vector<8x288xf32>
    %38 = arith.addf %33, %37 : vector<8x288xf32>
    %c0_46 = arith.constant 0 : index
    %c36 = arith.constant 36 : index
    %39 = vector.load %arg5[%c0_46, %c36] : memref<21x342xf32, #tpu.memory_space<vmem>>, vector<21x288xf32>
    %c0_47 = arith.constant 0 : index
    %c6 = arith.constant 6 : index
    %c0_48 = arith.constant 0 : index
    %c0_49 = arith.constant 0 : index
    %40 = vector.load %arg2[%c0_47, %c6, %c0_48, %c0_49] : memref<3x9x8x21xf32, #tpu.memory_space<vmem>>, vector<1x1x8x21xf32>
    %41 = vector.shape_cast %40 : vector<1x1x8x21xf32> to vector<8x21xf32>
    %cst_50 = arith.constant dense<0.000000e+00> : vector<8x288xf32>
    %42 = tpu.matmul %41, %39, %cst_50 {dimension_numbers = #tpu.dot_dimension_numbers<[1], [0], [0], [1], [0, 0, 1, 1], [], []>} : vector<8x21xf32>, vector<21x288xf32>, vector<8x288xf32> -> vector<8x288xf32>
    %43 = arith.addf %38, %42 : vector<8x288xf32>
    %c0_51 = arith.constant 0 : index
    %c37 = arith.constant 37 : index
    %44 = vector.load %arg5[%c0_51, %c37] : memref<21x342xf32, #tpu.memory_space<vmem>>, vector<21x288xf32>
    %c0_52 = arith.constant 0 : index
    %c7 = arith.constant 7 : index
    %c0_53 = arith.constant 0 : index
    %c0_54 = arith.constant 0 : index
    %45 = vector.load %arg2[%c0_52, %c7, %c0_53, %c0_54] : memref<3x9x8x21xf32, #tpu.memory_space<vmem>>, vector<1x1x8x21xf32>
    %46 = vector.shape_cast %45 : vector<1x1x8x21xf32> to vector<8x21xf32>
    %cst_55 = arith.constant dense<0.000000e+00> : vector<8x288xf32>
    %47 = tpu.matmul %46, %44, %cst_55 {dimension_numbers = #tpu.dot_dimension_numbers<[1], [0], [0], [1], [0, 0, 1, 1], [], []>} : vector<8x21xf32>, vector<21x288xf32>, vector<8x288xf32> -> vector<8x288xf32>
    %48 = arith.addf %43, %47 : vector<8x288xf32>
    %c0_56 = arith.constant 0 : index
    %c38 = arith.constant 38 : index
    %49 = vector.load %arg5[%c0_56, %c38] : memref<21x342xf32, #tpu.memory_space<vmem>>, vector<21x288xf32>
    %c0_57 = arith.constant 0 : index
    %c8 = arith.constant 8 : index
    %c0_58 = arith.constant 0 : index
    %c0_59 = arith.constant 0 : index
    %50 = vector.load %arg2[%c0_57, %c8, %c0_58, %c0_59] : memref<3x9x8x21xf32, #tpu.memory_space<vmem>>, vector<1x1x8x21xf32>
    %51 = vector.shape_cast %50 : vector<1x1x8x21xf32> to vector<8x21xf32>
    %cst_60 = arith.constant dense<0.000000e+00> : vector<8x288xf32>
    %52 = tpu.matmul %51, %49, %cst_60 {dimension_numbers = #tpu.dot_dimension_numbers<[1], [0], [0], [1], [0, 0, 1, 1], [], []>} : vector<8x21xf32>, vector<21x288xf32>, vector<8x288xf32> -> vector<8x288xf32>
    %53 = arith.addf %48, %52 : vector<8x288xf32>
    %cst_61 = arith.constant 0.000000e+00 : f32
    %54 = vector.broadcast %cst_61 : f32 to vector<8x288xf32>
    %55 = arith.maximumf %53, %54 : vector<8x288xf32>
    %56 = vector.broadcast %7 : vector<1x288xf32> to vector<8x288xf32>
    %57 = arith.mulf %55, %56 : vector<8x288xf32>
    %c4_62 = arith.constant 4 : index
    %c19_63 = arith.constant 19 : index
    %58 = vector.load %arg5[%c4_62, %c19_63] : memref<21x342xf32, #tpu.memory_space<vmem>>, vector<8x288xf32>
    tpu.vector_store %arg5[%c4_62, %c19_63], %57 {strides = array<i32>} : memref<21x342xf32, #tpu.memory_space<vmem>>, vector<8x288xf32>,
    %cst_64 = arith.constant 0.000000e+00 : f32
    %59 = vector.broadcast %cst_64 : f32 to vector<8x288xf32>
    %c0_65 = arith.constant 0 : index
    %c0_66 = arith.constant 0 : index
    %60 = vector.load %arg5[%c0_65, %c0_66] : memref<21x342xf32, #tpu.memory_space<vmem>>, vector<21x288xf32>
    %c1_67 = arith.constant 1 : index
    %c0_68 = arith.constant 0 : index
    %c0_69 = arith.constant 0 : index
    %c0_70 = arith.constant 0 : index
    %61 = vector.load %arg2[%c1_67, %c0_68, %c0_69, %c0_70] : memref<3x9x8x21xf32, #tpu.memory_space<vmem>>, vector<1x1x8x21xf32>
    %62 = vector.shape_cast %61 : vector<1x1x8x21xf32> to vector<8x21xf32>
    %cst_71 = arith.constant dense<0.000000e+00> : vector<8x288xf32>
    %63 = tpu.matmul %62, %60, %cst_71 {dimension_numbers = #tpu.dot_dimension_numbers<[1], [0], [0], [1], [0, 0, 1, 1], [], []>} : vector<8x21xf32>, vector<21x288xf32>, vector<8x288xf32> -> vector<8x288xf32>
    %64 = arith.addf %59, %63 : vector<8x288xf32>
    %c0_72 = arith.constant 0 : index
    %c1_73 = arith.constant 1 : index
    %65 = vector.load %arg5[%c0_72, %c1_73] : memref<21x342xf32, #tpu.memory_space<vmem>>, vector<21x288xf32>
    %c1_74 = arith.constant 1 : index
    %c1_75 = arith.constant 1 : index
    %c0_76 = arith.constant 0 : index
    %c0_77 = arith.constant 0 : index
    %66 = vector.load %arg2[%c1_74, %c1_75, %c0_76, %c0_77] : memref<3x9x8x21xf32, #tpu.memory_space<vmem>>, vector<1x1x8x21xf32>
    %67 = vector.shape_cast %66 : vector<1x1x8x21xf32> to vector<8x21xf32>
    %cst_78 = arith.constant dense<0.000000e+00> : vector<8x288xf32>
    %68 = tpu.matmul %67, %65, %cst_78 {dimension_numbers = #tpu.dot_dimension_numbers<[1], [0], [0], [1], [0, 0, 1, 1], [], []>} : vector<8x21xf32>, vector<21x288xf32>, vector<8x288xf32> -> vector<8x288xf32>
    %69 = arith.addf %64, %68 : vector<8x288xf32>
    %c0_79 = arith.constant 0 : index
    %c2_80 = arith.constant 2 : index
    %70 = vector.load %arg5[%c0_79, %c2_80] : memref<21x342xf32, #tpu.memory_space<vmem>>, vector<21x288xf32>
    %c1_81 = arith.constant 1 : index
    %c2_82 = arith.constant 2 : index
    %c0_83 = arith.constant 0 : index
    %c0_84 = arith.constant 0 : index
    %71 = vector.load %arg2[%c1_81, %c2_82, %c0_83, %c0_84] : memref<3x9x8x21xf32, #tpu.memory_space<vmem>>, vector<1x1x8x21xf32>
    %72 = vector.shape_cast %71 : vector<1x1x8x21xf32> to vector<8x21xf32>
    %cst_85 = arith.constant dense<0.000000e+00> : vector<8x288xf32>
    %73 = tpu.matmul %72, %70, %cst_85 {dimension_numbers = #tpu.dot_dimension_numbers<[1], [0], [0], [1], [0, 0, 1, 1], [], []>} : vector<8x21xf32>, vector<21x288xf32>, vector<8x288xf32> -> vector<8x288xf32>
    %74 = arith.addf %69, %73 : vector<8x288xf32>
    %c0_86 = arith.constant 0 : index
    %c18_87 = arith.constant 18 : index
    %75 = vector.load %arg5[%c0_86, %c18_87] : memref<21x342xf32, #tpu.memory_space<vmem>>, vector<21x288xf32>
    %c1_88 = arith.constant 1 : index
    %c3_89 = arith.constant 3 : index
    %c0_90 = arith.constant 0 : index
    %c0_91 = arith.constant 0 : index
    %76 = vector.load %arg2[%c1_88, %c3_89, %c0_90, %c0_91] : memref<3x9x8x21xf32, #tpu.memory_space<vmem>>, vector<1x1x8x21xf32>
    %77 = vector.shape_cast %76 : vector<1x1x8x21xf32> to vector<8x21xf32>
    %cst_92 = arith.constant dense<0.000000e+00> : vector<8x288xf32>
    %78 = tpu.matmul %77, %75, %cst_92 {dimension_numbers = #tpu.dot_dimension_numbers<[1], [0], [0], [1], [0, 0, 1, 1], [], []>} : vector<8x21xf32>, vector<21x288xf32>, vector<8x288xf32> -> vector<8x288xf32>
    %79 = arith.addf %74, %78 : vector<8x288xf32>
    %c0_93 = arith.constant 0 : index
    %c19_94 = arith.constant 19 : index
    %80 = vector.load %arg5[%c0_93, %c19_94] : memref<21x342xf32, #tpu.memory_space<vmem>>, vector<21x288xf32>
    %c1_95 = arith.constant 1 : index
    %c4_96 = arith.constant 4 : index
    %c0_97 = arith.constant 0 : index
    %c0_98 = arith.constant 0 : index
    %81 = vector.load %arg2[%c1_95, %c4_96, %c0_97, %c0_98] : memref<3x9x8x21xf32, #tpu.memory_space<vmem>>, vector<1x1x8x21xf32>
    %82 = vector.shape_cast %81 : vector<1x1x8x21xf32> to vector<8x21xf32>
    %cst_99 = arith.constant dense<0.000000e+00> : vector<8x288xf32>
    %83 = tpu.matmul %82, %80, %cst_99 {dimension_numbers = #tpu.dot_dimension_numbers<[1], [0], [0], [1], [0, 0, 1, 1], [], []>} : vector<8x21xf32>, vector<21x288xf32>, vector<8x288xf32> -> vector<8x288xf32>
    %84 = arith.addf %79, %83 : vector<8x288xf32>
    %c0_100 = arith.constant 0 : index
    %c20_101 = arith.constant 20 : index
    %85 = vector.load %arg5[%c0_100, %c20_101] : memref<21x342xf32, #tpu.memory_space<vmem>>, vector<21x288xf32>
    %c1_102 = arith.constant 1 : index
    %c5_103 = arith.constant 5 : index
    %c0_104 = arith.constant 0 : index
    %c0_105 = arith.constant 0 : index
    %86 = vector.load %arg2[%c1_102, %c5_103, %c0_104, %c0_105] : memref<3x9x8x21xf32, #tpu.memory_space<vmem>>, vector<1x1x8x21xf32>
    %87 = vector.shape_cast %86 : vector<1x1x8x21xf32> to vector<8x21xf32>
    %cst_106 = arith.constant dense<0.000000e+00> : vector<8x288xf32>
    %88 = tpu.matmul %87, %85, %cst_106 {dimension_numbers = #tpu.dot_dimension_numbers<[1], [0], [0], [1], [0, 0, 1, 1], [], []>} : vector<8x21xf32>, vector<21x288xf32>, vector<8x288xf32> -> vector<8x288xf32>
    %89 = arith.addf %84, %88 : vector<8x288xf32>
    %c0_107 = arith.constant 0 : index
    %c36_108 = arith.constant 36 : index
    %90 = vector.load %arg5[%c0_107, %c36_108] : memref<21x342xf32, #tpu.memory_space<vmem>>, vector<21x288xf32>
    %c1_109 = arith.constant 1 : index
    %c6_110 = arith.constant 6 : index
    %c0_111 = arith.constant 0 : index
    %c0_112 = arith.constant 0 : index
    %91 = vector.load %arg2[%c1_109, %c6_110, %c0_111, %c0_112] : memref<3x9x8x21xf32, #tpu.memory_space<vmem>>, vector<1x1x8x21xf32>
    %92 = vector.shape_cast %91 : vector<1x1x8x21xf32> to vector<8x21xf32>
    %cst_113 = arith.constant dense<0.000000e+00> : vector<8x288xf32>
    %93 = tpu.matmul %92, %90, %cst_113 {dimension_numbers = #tpu.dot_dimension_numbers<[1], [0], [0], [1], [0, 0, 1, 1], [], []>} : vector<8x21xf32>, vector<21x288xf32>, vector<8x288xf32> -> vector<8x288xf32>
    %94 = arith.addf %89, %93 : vector<8x288xf32>
    %c0_114 = arith.constant 0 : index
    %c37_115 = arith.constant 37 : index
    %95 = vector.load %arg5[%c0_114, %c37_115] : memref<21x342xf32, #tpu.memory_space<vmem>>, vector<21x288xf32>
    %c1_116 = arith.constant 1 : index
    %c7_117 = arith.constant 7 : index
    %c0_118 = arith.constant 0 : index
    %c0_119 = arith.constant 0 : index
    %96 = vector.load %arg2[%c1_116, %c7_117, %c0_118, %c0_119] : memref<3x9x8x21xf32, #tpu.memory_space<vmem>>, vector<1x1x8x21xf32>
    %97 = vector.shape_cast %96 : vector<1x1x8x21xf32> to vector<8x21xf32>
    %cst_120 = arith.constant dense<0.000000e+00> : vector<8x288xf32>
    %98 = tpu.matmul %97, %95, %cst_120 {dimension_numbers = #tpu.dot_dimension_numbers<[1], [0], [0], [1], [0, 0, 1, 1], [], []>} : vector<8x21xf32>, vector<21x288xf32>, vector<8x288xf32> -> vector<8x288xf32>
    %99 = arith.addf %94, %98 : vector<8x288xf32>
    %c0_121 = arith.constant 0 : index
    %c38_122 = arith.constant 38 : index
    %100 = vector.load %arg5[%c0_121, %c38_122] : memref<21x342xf32, #tpu.memory_space<vmem>>, vector<21x288xf32>
    %c1_123 = arith.constant 1 : index
    %c8_124 = arith.constant 8 : index
    %c0_125 = arith.constant 0 : index
    %c0_126 = arith.constant 0 : index
    %101 = vector.load %arg2[%c1_123, %c8_124, %c0_125, %c0_126] : memref<3x9x8x21xf32, #tpu.memory_space<vmem>>, vector<1x1x8x21xf32>
    %102 = vector.shape_cast %101 : vector<1x1x8x21xf32> to vector<8x21xf32>
    %cst_127 = arith.constant dense<0.000000e+00> : vector<8x288xf32>
    %103 = tpu.matmul %102, %100, %cst_127 {dimension_numbers = #tpu.dot_dimension_numbers<[1], [0], [0], [1], [0, 0, 1, 1], [], []>} : vector<8x21xf32>, vector<21x288xf32>, vector<8x288xf32> -> vector<8x288xf32>
    %104 = arith.addf %99, %103 : vector<8x288xf32>
    %cst_128 = arith.constant 0.000000e+00 : f32
    %105 = vector.broadcast %cst_128 : f32 to vector<8x288xf32>
    %106 = arith.maximumf %104, %105 : vector<8x288xf32>
    %107 = vector.broadcast %7 : vector<1x288xf32> to vector<8x288xf32>
    %108 = arith.mulf %106, %107 : vector<8x288xf32>
    %c12 = arith.constant 12 : index
    %c19_129 = arith.constant 19 : index
    %109 = vector.load %arg5[%c12, %c19_129] : memref<21x342xf32, #tpu.memory_space<vmem>>, vector<8x288xf32>
    tpu.vector_store %arg5[%c12, %c19_129], %108 {strides = array<i32>} : memref<21x342xf32, #tpu.memory_space<vmem>>, vector<8x288xf32>,
    %cst_130 = arith.constant 0.000000e+00 : f32
    %110 = vector.broadcast %cst_130 : f32 to vector<8x288xf32>
    %c0_131 = arith.constant 0 : index
    %c0_132 = arith.constant 0 : index
    %111 = vector.load %arg5[%c0_131, %c0_132] : memref<21x342xf32, #tpu.memory_space<vmem>>, vector<21x288xf32>
    %c2_133 = arith.constant 2 : index
    %c0_134 = arith.constant 0 : index
    %c0_135 = arith.constant 0 : index
    %c0_136 = arith.constant 0 : index
    %112 = vector.load %arg2[%c2_133, %c0_134, %c0_135, %c0_136] : memref<3x9x8x21xf32, #tpu.memory_space<vmem>>, vector<1x1x8x21xf32>
    %113 = vector.shape_cast %112 : vector<1x1x8x21xf32> to vector<8x21xf32>
    %cst_137 = arith.constant dense<0.000000e+00> : vector<8x288xf32>
    %114 = tpu.matmul %113, %111, %cst_137 {dimension_numbers = #tpu.dot_dimension_numbers<[1], [0], [0], [1], [0, 0, 1, 1], [], []>} : vector<8x21xf32>, vector<21x288xf32>, vector<8x288xf32> -> vector<8x288xf32>
    %115 = arith.addf %110, %114 : vector<8x288xf32>
    %c0_138 = arith.constant 0 : index
    %c1_139 = arith.constant 1 : index
    %116 = vector.load %arg5[%c0_138, %c1_139] : memref<21x342xf32, #tpu.memory_space<vmem>>, vector<21x288xf32>
    %c2_140 = arith.constant 2 : index
    %c1_141 = arith.constant 1 : index
    %c0_142 = arith.constant 0 : index
    %c0_143 = arith.constant 0 : index
    %117 = vector.load %arg2[%c2_140, %c1_141, %c0_142, %c0_143] : memref<3x9x8x21xf32, #tpu.memory_space<vmem>>, vector<1x1x8x21xf32>
    %118 = vector.shape_cast %117 : vector<1x1x8x21xf32> to vector<8x21xf32>
    %cst_144 = arith.constant dense<0.000000e+00> : vector<8x288xf32>
    %119 = tpu.matmul %118, %116, %cst_144 {dimension_numbers = #tpu.dot_dimension_numbers<[1], [0], [0], [1], [0, 0, 1, 1], [], []>} : vector<8x21xf32>, vector<21x288xf32>, vector<8x288xf32> -> vector<8x288xf32>
    %120 = arith.addf %115, %119 : vector<8x288xf32>
    %c0_145 = arith.constant 0 : index
    %c2_146 = arith.constant 2 : index
    %121 = vector.load %arg5[%c0_145, %c2_146] : memref<21x342xf32, #tpu.memory_space<vmem>>, vector<21x288xf32>
    %c2_147 = arith.constant 2 : index
    %c2_148 = arith.constant 2 : index
    %c0_149 = arith.constant 0 : index
    %c0_150 = arith.constant 0 : index
    %122 = vector.load %arg2[%c2_147, %c2_148, %c0_149, %c0_150] : memref<3x9x8x21xf32, #tpu.memory_space<vmem>>, vector<1x1x8x21xf32>
    %123 = vector.shape_cast %122 : vector<1x1x8x21xf32> to vector<8x21xf32>
    %cst_151 = arith.constant dense<0.000000e+00> : vector<8x288xf32>
    %124 = tpu.matmul %123, %121, %cst_151 {dimension_numbers = #tpu.dot_dimension_numbers<[1], [0], [0], [1], [0, 0, 1, 1], [], []>} : vector<8x21xf32>, vector<21x288xf32>, vector<8x288xf32> -> vector<8x288xf32>
    %125 = arith.addf %120, %124 : vector<8x288xf32>
    %c0_152 = arith.constant 0 : index
    %c18_153 = arith.constant 18 : index
    %126 = vector.load %arg5[%c0_152, %c18_153] : memref<21x342xf32, #tpu.memory_space<vmem>>, vector<21x288xf32>
    %c2_154 = arith.constant 2 : index
    %c3_155 = arith.constant 3 : index
    %c0_156 = arith.constant 0 : index
    %c0_157 = arith.constant 0 : index
    %127 = vector.load %arg2[%c2_154, %c3_155, %c0_156, %c0_157] : memref<3x9x8x21xf32, #tpu.memory_space<vmem>>, vector<1x1x8x21xf32>
    %128 = vector.shape_cast %127 : vector<1x1x8x21xf32> to vector<8x21xf32>
    %cst_158 = arith.constant dense<0.000000e+00> : vector<8x288xf32>
    %129 = tpu.matmul %128, %126, %cst_158 {dimension_numbers = #tpu.dot_dimension_numbers<[1], [0], [0], [1], [0, 0, 1, 1], [], []>} : vector<8x21xf32>, vector<21x288xf32>, vector<8x288xf32> -> vector<8x288xf32>
    %130 = arith.addf %125, %129 : vector<8x288xf32>
    %c0_159 = arith.constant 0 : index
    %c19_160 = arith.constant 19 : index
    %131 = vector.load %arg5[%c0_159, %c19_160] : memref<21x342xf32, #tpu.memory_space<vmem>>, vector<21x288xf32>
    %c2_161 = arith.constant 2 : index
    %c4_162 = arith.constant 4 : index
    %c0_163 = arith.constant 0 : index
    %c0_164 = arith.constant 0 : index
    %132 = vector.load %arg2[%c2_161, %c4_162, %c0_163, %c0_164] : memref<3x9x8x21xf32, #tpu.memory_space<vmem>>, vector<1x1x8x21xf32>
    %133 = vector.shape_cast %132 : vector<1x1x8x21xf32> to vector<8x21xf32>
    %cst_165 = arith.constant dense<0.000000e+00> : vector<8x288xf32>
    %134 = tpu.matmul %133, %131, %cst_165 {dimension_numbers = #tpu.dot_dimension_numbers<[1], [0], [0], [1], [0, 0, 1, 1], [], []>} : vector<8x21xf32>, vector<21x288xf32>, vector<8x288xf32> -> vector<8x288xf32>
    %135 = arith.addf %130, %134 : vector<8x288xf32>
    %c0_166 = arith.constant 0 : index
    %c20_167 = arith.constant 20 : index
    %136 = vector.load %arg5[%c0_166, %c20_167] : memref<21x342xf32, #tpu.memory_space<vmem>>, vector<21x288xf32>
    %c2_168 = arith.constant 2 : index
    %c5_169 = arith.constant 5 : index
    %c0_170 = arith.constant 0 : index
    %c0_171 = arith.constant 0 : index
    %137 = vector.load %arg2[%c2_168, %c5_169, %c0_170, %c0_171] : memref<3x9x8x21xf32, #tpu.memory_space<vmem>>, vector<1x1x8x21xf32>
    %138 = vector.shape_cast %137 : vector<1x1x8x21xf32> to vector<8x21xf32>
    %cst_172 = arith.constant dense<0.000000e+00> : vector<8x288xf32>
    %139 = tpu.matmul %138, %136, %cst_172 {dimension_numbers = #tpu.dot_dimension_numbers<[1], [0], [0], [1], [0, 0, 1, 1], [], []>} : vector<8x21xf32>, vector<21x288xf32>, vector<8x288xf32> -> vector<8x288xf32>
    %140 = arith.addf %135, %139 : vector<8x288xf32>
    %c0_173 = arith.constant 0 : index
    %c36_174 = arith.constant 36 : index
    %141 = vector.load %arg5[%c0_173, %c36_174] : memref<21x342xf32, #tpu.memory_space<vmem>>, vector<21x288xf32>
    %c2_175 = arith.constant 2 : index
    %c6_176 = arith.constant 6 : index
    %c0_177 = arith.constant 0 : index
    %c0_178 = arith.constant 0 : index
    %142 = vector.load %arg2[%c2_175, %c6_176, %c0_177, %c0_178] : memref<3x9x8x21xf32, #tpu.memory_space<vmem>>, vector<1x1x8x21xf32>
    %143 = vector.shape_cast %142 : vector<1x1x8x21xf32> to vector<8x21xf32>
    %cst_179 = arith.constant dense<0.000000e+00> : vector<8x288xf32>
    %144 = tpu.matmul %143, %141, %cst_179 {dimension_numbers = #tpu.dot_dimension_numbers<[1], [0], [0], [1], [0, 0, 1, 1], [], []>} : vector<8x21xf32>, vector<21x288xf32>, vector<8x288xf32> -> vector<8x288xf32>
    %145 = arith.addf %140, %144 : vector<8x288xf32>
    %c0_180 = arith.constant 0 : index
    %c37_181 = arith.constant 37 : index
    %146 = vector.load %arg5[%c0_180, %c37_181] : memref<21x342xf32, #tpu.memory_space<vmem>>, vector<21x288xf32>
    %c2_182 = arith.constant 2 : index
    %c7_183 = arith.constant 7 : index
    %c0_184 = arith.constant 0 : index
    %c0_185 = arith.constant 0 : index
    %147 = vector.load %arg2[%c2_182, %c7_183, %c0_184, %c0_185] : memref<3x9x8x21xf32, #tpu.memory_space<vmem>>, vector<1x1x8x21xf32>
    %148 = vector.shape_cast %147 : vector<1x1x8x21xf32> to vector<8x21xf32>
    %cst_186 = arith.constant dense<0.000000e+00> : vector<8x288xf32>
    %149 = tpu.matmul %148, %146, %cst_186 {dimension_numbers = #tpu.dot_dimension_numbers<[1], [0], [0], [1], [0, 0, 1, 1], [], []>} : vector<8x21xf32>, vector<21x288xf32>, vector<8x288xf32> -> vector<8x288xf32>
    %150 = arith.addf %145, %149 : vector<8x288xf32>
    %c0_187 = arith.constant 0 : index
    %c38_188 = arith.constant 38 : index
    %151 = vector.load %arg5[%c0_187, %c38_188] : memref<21x342xf32, #tpu.memory_space<vmem>>, vector<21x288xf32>
    %c2_189 = arith.constant 2 : index
    %c8_190 = arith.constant 8 : index
    %c0_191 = arith.constant 0 : index
    %c0_192 = arith.constant 0 : index
    %152 = vector.load %arg2[%c2_189, %c8_190, %c0_191, %c0_192] : memref<3x9x8x21xf32, #tpu.memory_space<vmem>>, vector<1x1x8x21xf32>
    %153 = vector.shape_cast %152 : vector<1x1x8x21xf32> to vector<8x21xf32>
    %cst_193 = arith.constant dense<0.000000e+00> : vector<8x288xf32>
    %154 = tpu.matmul %153, %151, %cst_193 {dimension_numbers = #tpu.dot_dimension_numbers<[1], [0], [0], [1], [0, 0, 1, 1], [], []>} : vector<8x21xf32>, vector<21x288xf32>, vector<8x288xf32> -> vector<8x288xf32>
    %155 = arith.addf %150, %154 : vector<8x288xf32>
    %cst_194 = arith.constant 0.000000e+00 : f32
    %156 = vector.broadcast %cst_194 : f32 to vector<8x288xf32>
    %157 = arith.maximumf %155, %156 : vector<8x288xf32>
    %158 = vector.broadcast %7 : vector<1x288xf32> to vector<8x288xf32>
    %159 = arith.mulf %157, %158 : vector<8x288xf32>
    %c0_195 = arith.constant 0 : index
    %c0_196 = arith.constant 0 : index
    %c0_197 = arith.constant 0 : index
    %160 = vector.load %arg4[%c0_195, %c0_196, %c0_197] : memref<1x8x288xf32, #tpu.memory_space<vmem>>, vector<1x8x288xf32>
    %161 = vector.shape_cast %160 : vector<1x8x288xf32> to vector<8x288xf32>
    %162 = vector.shape_cast %159 : vector<8x288xf32> to vector<1x8x288xf32>
    tpu.vector_store %arg4[%c0_195, %c0_196, %c0_197], %162 {strides = array<i32>} : memref<1x8x288xf32, #tpu.memory_space<vmem>>, vector<1x8x288xf32>,
    return
  }
  func.func @transform_0(%arg0: i32) -> (i32, i32, i32) {
    %c0_i32 = arith.constant 0 : i32
    %c0_i32_0 = arith.constant 0 : i32
    %c0_i32_1 = arith.constant 0 : i32
    return %arg0, %c0_i32, %c0_i32_0 : i32, i32, i32
  }
  func.func @transform_1(%arg0: i32) -> (i32, i32, i32, i32) {
    %c0_i32 = arith.constant 0 : i32
    %c0_i32_0 = arith.constant 0 : i32
    %c0_i32_1 = arith.constant 0 : i32
    %c0_i32_2 = arith.constant 0 : i32
    %c0_i32_3 = arith.constant 0 : i32
    return %c0_i32, %c0_i32_0, %c0_i32_1, %c0_i32_2 : i32, i32, i32, i32
  }
  func.func @transform_2(%arg0: i32) -> (i32, i32) {
    %c0_i32 = arith.constant 0 : i32
    %c0_i32_0 = arith.constant 0 : i32
    %c0_i32_1 = arith.constant 0 : i32
    return %c0_i32, %c0_i32_0 : i32, i32
  }
  func.func @transform_3(%arg0: i32) -> (i32, i32, i32) {
    %c0_i32 = arith.constant 0 : i32
    %c0_i32_0 = arith.constant 0 : i32
    %c0_i32_1 = arith.constant 0 : i32
    return %arg0, %c0_i32, %c0_i32_0 : i32, i32, i32
  }
}

</mosaic_0001>

<bundles_post_ra>
// kernel: tpu_custom_call.1
= control target key start
LH: loop header
LB: loop body
LE: loop exit
PB: predicated region body
PF: predicated region fallthrough
CT: control target
= control target key end

     0   :  { %8 = vsyncpa [#allocation4], 0  ;;  %s7487_s0 = inlined_call_operand.hbm [shape: f32[2,4,324], index: 0, kind: input, shape index: {}]   ;;  %s7488_s1 = inlined_call_operand.hbm [shape: f32[3,9,8,21], index: 1, kind: input, shape index: {}]   ;;  %s7489_s2 = inlined_call_operand.vmem [shape: f32[1,288], index: 2, kind: input, shape index: {}]   ;;  %s7490_s3 = inlined_call_operand.hbm [shape: f32[2,8,288], index: 3, kind: output, shape index: {}]  }
   0x1   :  { %10 = vsyncpa [#allocation4 + $0x1], 0 }
   0x2   :  { %11 = vsyncpa [#allocation7], 0 }
   0x3   :  { %12 = vsyncpa [#allocation5], 0 }
   0x4   :  { %14 = vsyncpa [#allocation5 + $0x1], 0  ;;  %s6101_s12 = smov 0   ;;  %s6103_s13 = smov 0  }
   0x5   :  { %s6105_s14 = smov 0   ;;  %s6107_s15 = smov 0  }
   0x6 LB: > { %s6122_s16 = sadd.s32 4294967295, %s6062_s15   ;;  %s5364_s17 = sadd.s32 4294967294, %s6062_s15   ;;  %s6062_s15 = sphi %s6107_s15, %s7512_s15   ;;  %s6058_s14 = sphi %s6105_s14, %s7511_s14   ;;  %s6054_s13 = sphi %s6103_s13, %s7510_s13   ;;  %s6050_s12 = sphi %s6101_s12, %s7509_s12  }
   0x7   : > { %p40_p0 = scmp.ne.s32.totalorder %s6054_s13, %s6050_s12  ;;  %p7491_p1 = scmp.eq.s32.totalorder %s6122_s16, 0 }
   0x8   : > { %p112_p3 = scmp.eq.s32.totalorder %s5364_s17, 1  ;;  %p5365_p5 = scmp.ge.s32.totalorder %s6062_s15, 1 }
   0x9   : > { %p6131_p4 = por %p7491_p1, %p40_p0  ;;  %p119_p7 = scmp.lt.s32.totalorder %s6062_s15, 3 }
   0xa   : > { %p6136_p6 = por %p112_p3, %p40_p0  ;;  %s6064_s21 = smov [#allocation6]  }
   0xb   : > { %s7495_s18 = scalar_select %p6131_p4, 1, 0 }
   0xc   : > { %s7496_s19 = scalar_select %p6136_p6, 1, 0 }
   0xd   : > { %p6141_p8 = pnand %p5365_p5, %p119_p7  ;;  %s131_s22 = sshll.u32 %s6064_s21, 4  ;;  %s132_s22 = int_to_ptr.vmem [resolvable:$true] %s131_s22 }
   0xe   : > { %s6155_s24 = sadd.s32 1, %s6062_s15   ;;  %s27_s25 = sadd.s32 1, %s6058_s14 }
   0xf   : > { %s7497_s20 = scalar_select %p6141_p8, 1, 0 }
  0x10   : > { %p5873_p9 = pneg %p6141_p8  ;;  %s24_s26 = ssub.s32 %s6062_s15, %s6155_s24 }
  0x11   : > { %s5951_s27 = scalar_lea.vmem %s132_s22, 3456  ;;  %p5959_p5 = scmp.lt.s32.totalorder %s132_s22, %s132_s22 }
  0x12   : > { %p6150_p11 = pnand %p5873_p9, %p7491_p1  ;;  %p5952_p13 = scmp.ne.s32.totalorder %s132_s22, %s5951_s27 }
  0x13   : > { %p5960_p7 = scmp.lt.s32.totalorder %s5951_s27, %s5951_s27 }
  0x14   : > { %p5942_p12 = pneg %p6150_p11 }
  0x15   : > { %p5961_p10 = por %p5960_p7, %p5959_p5 }
  0x16   : > { %p5954_p0 = pnand %p5952_p13, %p5942_p12 }
  0x18   : > { %p5955_p3 = pneg %p5954_p0 }
  0x1a   : > { %p5962_p2 = pnand %p5961_p10, %p5955_p3 }
  0x1c   : > { %5965 = shalt.err (!%p5962_p2)
}
  0x1d   : > { %s6065_s28 = smov 128   ;;  %s6066_s29 = smov 8  }
  0x1e   : > { %5876 = dma.hbm_to_vmem [thread:$0]  (!%p6150_p11), %s7488_s1, 3456, %s132_s22, [#allocation7], %s6065_s28, %s6065_s28, %s6066_s29  }
  0x1f   : > { %p25_p9 = scmp.eq.s32.totalorder %s24_s26, 0  ;;  %p34_p12 = scmp.ne.s32.totalorder %s6058_s14, %s6054_s13 }
  0x20   : > { %p35_p10 = scmp.eq.s32.totalorder %s6062_s15, 0  ;;  %p5886_p2 = scmp.lt.s32.totalorder %s6062_s15, 2 }
  0x21   : > { %s6172_s5 = scalar_select %p25_p9, %s6058_s14, %s27_s25  }
  0x22   : > { %p36_p13 = por %p35_p10, %p34_p12  ;;  %p7499_p0 = scmp.eq.s32.totalorder %s6122_s16, 1 }
  0x23   : > { %s148_s7 = sand.u32 1, %s6058_s14   ;;  %s5861_s8 = smul.u32 192, %s6062_s15 }
  0x24   : > { %p6176_p3 = por %p7499_p0, %p34_p12  ;;  %s5860_s9 = smul.u32 12, %s148_s7 }
  0x25   : > { %p6182_p5 = pnand %p5886_p2, %p36_p13  ;;  %s6189_s21 = scalar_lea.hbm %s7487_s0, %s5861_s8 }
  0x26   : > { %s7500_s6 = scalar_select %p6176_p3, 1, 0 }
  0x27   : > { %s152_s22 = scalar_lea.vmem [#allocation3], %s5860_s9  ;;  %s149_s25 = scalar_lea.sflag [#allocation4], %s148_s7 }
  0x28   : > { %s160_s23 = sshll.u32 %s152_s22, 4  ;;  %s5966_s26 = scalar_lea.hbm %s6189_s21, 192  ;;  %s161_s23 = int_to_ptr.vmem [resolvable:$true] %s160_s23 }
  0x29   : > { %p5967_p11 = scmp.ne.s32.totalorder %s6189_s21, %s5966_s26  ;;  %p5968_p7 = pneg %p6182_p5 }
  0x2a   : > { %s5971_s29 = scalar_lea.hbm %s7487_s0, 384  ;;  %p5972_p10 = scmp.lt.s32.totalorder %s6189_s21, %s7487_s0 }
  0x2b   : > { %p5969_p9 = pnand %p5968_p7, %p5967_p11  ;;  %p5973_p2 = scmp.lt.s32.totalorder %s5971_s29, %s5966_s26 }
  0x2d   : > { %p5970_p12 = pneg %p5969_p9  ;;  %p5974_p13 = por %p5973_p2, %p5972_p10 }
  0x2f   : > { %p5975_p0 = pnand %p5974_p13, %p5970_p12 }
  0x31   : > { %5978 = shalt.err (!%p5975_p0)
}
  0x32   : > { %s5979_s8 = scalar_lea.vmem %s161_s23, 192  ;;  %s6067_s7 = smov [#allocation3]  }
  0x33   : > { %p5980_p1 = scmp.ne.s32.totalorder %s161_s23, %s5979_s8  ;;  %s5984_s9 = sshll.u32 %s6067_s7, 4  ;;  %s5985_s9 = int_to_ptr.vmem [resolvable:$false] %s5984_s9 }
  0x34   : > { %s5986_s11 = scalar_lea.vmem %s5985_s9, 384  ;;  %p5987_p11 = scmp.lt.s32.totalorder %s161_s23, %s5985_s9 }
  0x35   : > { %p5982_p6 = pnand %p5980_p1, %p5968_p7  ;;  %p5988_p9 = scmp.lt.s32.totalorder %s5986_s11, %s5979_s8 }
  0x37   : > { %p5983_p3 = pneg %p5982_p6  ;;  %p5989_p4 = por %p5988_p9, %p5987_p11 }
  0x39   : > { %p5990_p8 = pnand %p5989_p4, %p5983_p3 }
  0x3b   : > { %5993 = shalt.err (!%p5990_p8)
}
  0x3c   : > { %5880 = dma.hbm_to_vmem [thread:$0]  (!%p6182_p5), %s6189_s21, 192, %s161_s23, %s149_s25  }
  0x3d   : > { %p7502_p12 = scmp.ne.s32.totalorder %s7497_s20, 0 }
  0x3e   : > { %s6208_s17 = sand.u32 (!%p7502_p12), 1, %s6054_s13   ;;  %p7503_p1 = scmp.ne.s32.totalorder (!%p7502_p12), %s7495_s18, 0 }
  0x3f   : > { %169 = sbr.rel (%p7502_p12) target bundleno = 1644 (0x66c), region = 32  ;;  %s172_s26 = scalar_lea.sflag (!%p7502_p12), [#allocation4], %s6208_s17 }
  0x40   : > { %s5862_s22 = smul.u32 (!%p7502_p12), 12, %s6208_s17 }
  0x42   : > { %s175_s27 = scalar_lea.vmem (!%p7502_p12), [#allocation3], %s5862_s22 }
  0x44   : > { %6037 = dma.done.wait (%p7503_p1), %s172_s26, 192  }
  0x45   : > { %6039 = vsyncadd (%p7503_p1), %s172_s26, 4294967104  ;;  %p7504_p4 = scmp.eq.s32.totalorder %s6122_s16, 0 }
  0x47   : > { %6041 = dma.done.wait (%p7504_p4), [#allocation7], 3456   ;;  %p7505_p6 = pmov %p7504_p4 }
  0x48   : > { %vm204_vm0 = vcmask 703488   ;;  %vm211_vm1 = vcmask 700416   ;;  %v222_v0 = vlaneseq  ;;  %v6068_v1 = vmov 0.0   ;;  %s6069_s18 = smov 127   ;;  %v213_v3 = vld [vmem:[%s175_s27] sm:$0xff]  ;;  %s6072_s20 = smov 126  }
  0x49   : > { %6043 = vsyncadd (%p7505_p6), [#allocation7], 4294963840  ;;  %208 = vst.msk [vmem:[#allocation2 + $0x28] sm:$0xff] %vm204_vm0, %v6068_v1  ;;  %259 = vrot.lane.b32.xlu1 %v6068_v1, %s6069_s18  ;;  %5617 = vmatprep.subr.mxu1 %v6068_v1  ;;  %v6070_v2 = vmov 1.0   ;;  %vm220_vm3 = vcmask 551936   ;;  %v216_v6 = vcombine.high %v213_v3, %v213_v3  ;;  %vm6071_vm4 = vmmov 0  }
  0x4a   : > { %202 = vst [vmem:[#allocation2] sm:$0xff] %v6068_v1  ;;  %203 = vst [vmem:[#allocation2 + $0x8] sm:$0xff] %v6068_v1  ;;  %vm224_vm2 = vcmp.lt.s32.totalorder %v222_v0, 342  ;;  %357 = vmatprep.mubr.f32.mxu0 %v6068_v1  ;;  %v214_v4 = vld [vmem:[%s175_s27 + $0x8] sm:$0xf]  ;;  %5623 = vmatprep.mubr.msk.f32.mxu1 %vm6071_vm4, %v6068_v1  ;;  %s6073_s10 = smov 110  }
  0x4b   : > { %205 = vst.msk [vmem:[#allocation2 + $0x10] sm:$0xff] %vm204_vm0, %v6068_v1  ;;  %206 = vst [vmem:[#allocation2 + $0x18] sm:$0xff] %v6068_v1  ;;  %s6074_s21 = smov 109   ;;  %s6075_s23 = smov 108   ;;  %vm286_vm5 = vcmask 1044480   ;;  %vm269_vm6 = vcmask 1039360  }
  0x4c   : > { %207 = vst [vmem:[#allocation2 + $0x20] sm:$0xff] %v6068_v1  ;;  %209 = vst [vmem:[#allocation2 + $0x30] sm:$0x1f] %v6068_v1  ;;  %s6076_s25 = smov 92   ;;  %s6077_s28 = smov 91   ;;  %v241_v26 = vld [vmem:[#allocation6 + $0x8] sm:$0xff] }
  0x4d   : > { %210 = vst [vmem:[#allocation2 + $0x38] sm:$0x1f] %v6068_v1  ;;  %212 = vst.msk [vmem:[#allocation2 + $0x40] sm:$0x1f] %vm211_vm1, %v6068_v1  ;;  %257 = vrot.lane.b32.xlu1 %v6068_v1, %s6069_s18  ;;  %s6078_s29 = smov 90   ;;  %vm282_vm7 = vcmask 171008  }
  0x4e   : > { %227 = vst.msk [vmem:[#allocation2 + $0x34] ss:$8 sm:$0x7] %vm224_vm2, %v6070_v2  ;;  %218 = vst [vmem:[#allocation2] sm:$0xf] %v213_v3  ;;  %v239_v34 = vld [vmem:[#allocation6] sm:$0xff] }
  0x4f   : > { %221 = vst.msk [vmem:[#allocation2 + $0x10] sm:$0xf] %vm220_vm3, %v214_v4  ;;  %219 = vst [vmem:[#allocation2 + $0x8] sm:$0xf] %v216_v6  ;;  %vm604_vm8 = vcmask 1031168   ;;  %v585_v44 = vld [vmem:[#allocation6 + $0x10] sm:$0xff] }
  0x50   : > { %v6236_v5 = vld [vmem:[#allocation2 + $0x28] sm:$0xff]  ;;  %vm790_vm9 = vcmask 900096   ;;  %v771_v56 = vld [vmem:[#allocation6 + $0x18] sm:$0xff]  ;;  %vm976_vm10 = vcmask 891904   ;;  %vm1162_vm11 = vcmask 883712   ;;  %vm1348_vm12 = vcmask 752640  }
  0x51   : > { %261 = vrot.lane.b32.xlu0 %v6236_v5, %s6069_s18  ;;  %vm1534_vm13 = vcmask 744448   ;;  %vm1720_vm14 = vcmask 736256   ;;  %s6079_s8 = smov 19   ;;  %vm1920_vm15 = vcmask 154624   ;;  %vm1926_vm0 = vcmask 1047708   ;;  %s5863_s7 = smul.u32 24, %s6208_s17 }
  0x52   : > { %vm1931_vm1 = vcmask 1043608   ;;  %vm1929_vm2 = vcmask 416772   ;;  %vm1934_vm3 = vcmask 412672   ;;  %s5864_s9 = smul.u32 384, %s6122_s16  ;;  %p7506_p3 = scmp.ne.s32.totalorder %s7500_s6, 0 }
  0x53   : > { %s201_s11 = scalar_lea.vmem [#allocation8], %s5863_s7  ;;  %s6080_s16 = smov [#allocation8]  }
  0x54   : > { %s5284_s22 = sshll.u32 %s201_s11, 4  ;;  %s5285_s22 = int_to_ptr.vmem [resolvable:$true] %s5284_s22 }
  0x55   : > { %v6240_v7 = vld [vmem:[#allocation2 + $0x38] sm:$0x1f]  ;;  %v6242_v8 = vld [vmem:[#allocation2 + $0x30] sm:$0x1f]  ;;  %v6250_v9 = vld [vmem:[#allocation2 + $0x40] sm:$0x1f] }
  0x56   : > { %263 = vrot.lane.b32.xlu1 %v6242_v8, %s6069_s18  ;;  %265 = vrot.lane.b32.xlu0 %v6240_v7, %s6069_s18  ;;  %v6254_v10 = vld [vmem:[#allocation2 + $0x10] sm:$0xff]  ;;  %v6258_v11 = vld [vmem:[#allocation2] sm:$0xff]  ;;  %v6264_v12 = vld [vmem:[#allocation2 + $0x8] sm:$0xff] }
  0x5a   : > { %600 = vrot.lane.b32.xlu1 %v6240_v7, %s6072_s20  ;;  %267 = vrot.lane.b32.xlu0 %v6250_v9, %s6069_s18 }
  0x5e   : > { %255 = vrot.lane.b32.xlu1 %v6254_v10, %s6069_s18  ;;  %251 = vrot.lane.b32.xlu0 %v6258_v11, %s6069_s18 }
  0x62   : > { %598 = vrot.lane.b32.xlu1 %v6242_v8, %s6072_s20  ;;  %253 = vrot.lane.b32.xlu0 %v6264_v12, %s6069_s18 }
  0x66   : > { %596 = vrot.lane.b32.xlu1 %v6236_v5, %s6072_s20  ;;  %602 = vrot.lane.b32.xlu0 %v6250_v9, %s6072_s20 }
  0x6a   : > { %588 = vrot.lane.b32.xlu1 %v6264_v12, %s6072_s20  ;;  %594 = vrot.lane.b32.xlu0 %v6068_v1, %s6072_s20 }
  0x6e   : > { %586 = vrot.lane.b32.xlu1 %v6258_v11, %s6072_s20  ;;  %592 = vrot.lane.b32.xlu0 %v6068_v1, %s6072_s20 }
  0x72   : > { %788 = vrot.lane.b32.xlu1 %v6250_v9, %s6073_s10  ;;  %590 = vrot.lane.b32.xlu0 %v6254_v10, %s6072_s20 }
  0x76   : > { %780 = vrot.lane.b32.xlu1 %v6068_v1, %s6073_s10  ;;  %786 = vrot.lane.b32.xlu0 %v6240_v7, %s6073_s10 }
  0x7a   : > { %778 = vrot.lane.b32.xlu1 %v6068_v1, %s6073_s10  ;;  %784 = vrot.lane.b32.xlu0 %v6242_v8, %s6073_s10 }
  0x7e   : > { %776 = vrot.lane.b32.xlu1 %v6254_v10, %s6073_s10  ;;  %782 = vrot.lane.b32.xlu0 %v6236_v5, %s6073_s10 }
  0x82   : > { %972 = vrot.lane.b32.xlu1 %v6240_v7, %s6074_s21  ;;  %774 = vrot.lane.b32.xlu0 %v6264_v12, %s6073_s10 }
  0x86   : > { %970 = vrot.lane.b32.xlu1 %v6242_v8, %s6074_s21  ;;  %772 = vrot.lane.b32.xlu0 %v6258_v11, %s6073_s10 }
  0x8a   : > { %968 = vrot.lane.b32.xlu1 %v6236_v5, %s6074_s21  ;;  %974 = vrot.lane.b32.xlu0 %v6250_v9, %s6074_s21 }
  0x8e   : > { %960 = vrot.lane.b32.xlu1 %v6264_v12, %s6074_s21  ;;  %966 = vrot.lane.b32.xlu0 %v6068_v1, %s6074_s21 }
  0x92   : > { %958 = vrot.lane.b32.xlu1 %v6258_v11, %s6074_s21  ;;  %964 = vrot.lane.b32.xlu0 %v6068_v1, %s6074_s21 }
  0x96   : > { %1160 = vrot.lane.b32.xlu1 %v6250_v9, %s6075_s23  ;;  %962 = vrot.lane.b32.xlu0 %v6254_v10, %s6074_s21 }
  0x9a   : > { %1152 = vrot.lane.b32.xlu1 %v6068_v1, %s6075_s23  ;;  %1158 = vrot.lane.b32.xlu0 %v6240_v7, %s6075_s23 }
  0x9e   : > { %1150 = vrot.lane.b32.xlu1 %v6068_v1, %s6075_s23  ;;  %1156 = vrot.lane.b32.xlu0 %v6242_v8, %s6075_s23 }
  0xa2   : > { %1148 = vrot.lane.b32.xlu1 %v6254_v10, %s6075_s23  ;;  %1154 = vrot.lane.b32.xlu0 %v6236_v5, %s6075_s23 }
  0xa6   : > { %1344 = vrot.lane.b32.xlu1 %v6240_v7, %s6076_s25  ;;  %1146 = vrot.lane.b32.xlu0 %v6264_v12, %s6075_s23 }
  0xaa   : > { %1342 = vrot.lane.b32.xlu1 %v6242_v8, %s6076_s25  ;;  %1144 = vrot.lane.b32.xlu0 %v6258_v11, %s6075_s23 }
  0xae   : > { %1340 = vrot.lane.b32.xlu1 %v6236_v5, %s6076_s25  ;;  %1346 = vrot.lane.b32.xlu0 %v6250_v9, %s6076_s25 }
  0xb2   : > { %1332 = vrot.lane.b32.xlu1 %v6264_v12, %s6076_s25  ;;  %1338 = vrot.lane.b32.xlu0 %v6068_v1, %s6076_s25 }
  0xb6   : > { %1330 = vrot.lane.b32.xlu1 %v6258_v11, %s6076_s25  ;;  %1336 = vrot.lane.b32.xlu0 %v6068_v1, %s6076_s25 }
  0xba   : > { %1532 = vrot.lane.b32.xlu1 %v6250_v9, %s6077_s28  ;;  %1334 = vrot.lane.b32.xlu0 %v6254_v10, %s6076_s25 }
  0xbb   : > { %v260_v13 = vpop.permute.xlu1 %259 }
  0xbe   : > { %1524 = vrot.lane.b32.xlu1 %v6068_v1, %s6077_s28  ;;  %1530 = vrot.lane.b32.xlu0 %v6240_v7, %s6077_s28 }
  0xbf   : > { %v258_v14 = vpop.permute.xlu1 %257 }
  0xc0   : > { %v272_v25 = vsel %vm269_vm6, %v258_v14, %v260_v13  ;;  %v957_v14 = vld [vmem:[#allocation6 + $0x20] sm:$0xff] }
  0xc2   : > { %1522 = vrot.lane.b32.xlu1 %v6068_v1, %s6077_s28  ;;  %1528 = vrot.lane.b32.xlu0 %v6242_v8, %s6077_s28 }
  0xc3   : > { %v262_v15 = vpop.permute.xlu0 %261 }
  0xc4   : > { %v273_v23 = vsel %vm269_vm6, %v260_v13, %v262_v15 }
  0xc6   : > { %1520 = vrot.lane.b32.xlu1 %v6254_v10, %s6077_s28  ;;  %1526 = vrot.lane.b32.xlu0 %v6236_v5, %s6077_s28 }
  0xc8   : > { %v264_v16 = vpop.permute.xlu1 %263  ;;  %v266_v17 = vpop.permute.xlu0 %265 }
  0xc9   : > { %v274_v21 = vsel %vm269_vm6, %v264_v16, %v266_v17 }
  0xca   : > { %1716 = vrot.lane.b32.xlu1 %v6240_v7, %s6078_s29  ;;  %1518 = vrot.lane.b32.xlu0 %v6264_v12, %s6077_s28 }
  0xcc   : > { %v6374_v18 = vpop.permute.xlu1 %600  ;;  %v268_v19 = vpop.permute.xlu0 %267 }
  0xcd   : > { %5618 = vmatpush3.msk.msra.mxu1 %vm286_vm5, %v268_v19  ;;  %v275_v20 = vsel %vm269_vm6, %v266_v17, %v268_v19 }
  0xce   : > { %1714 = vrot.lane.b32.xlu1 %v6242_v8, %s6078_s29  ;;  %5371 = vmatprep.subr.msk.mxu0 %vm286_vm5, %v275_v20 }
  0xcf   : > { %5619 = vmatprep.subr.mxu1 %v6068_v1  ;;  %1516 = vrot.lane.b32.xlu0 %v6258_v11, %s6077_s28 }
  0xd0   : > { %v256_v22 = vpop.permute.xlu1 %255  ;;  %5372 = vmatpush1.msk.msra.mxu0 %vm286_vm5, %v274_v21  ;;  %5620 = vmatpush3.msra.mxu1 %v262_v15  ;;  %v252_v24 = vpop.permute.xlu0 %251 }
  0xd1   : > { %321 = vmatprep.subr.mxu0 %v273_v23  ;;  %5621 = vmatprep.subr.mxu1 %v6068_v1 }
  0xd2   : > { %322 = vmatpush1.msra.mxu0 %v272_v25  ;;  %5622 = vmatpush3.msra.mxu1 %v256_v22 }
  0xd3   : > { %1712 = vrot.lane.b32.xlu1 %v6236_v5, %s6078_s29  ;;  %1718 = vrot.lane.b32.xlu0 %v6250_v9, %s6078_s29 }
  0xd4   : > { %v599_v27 = vpop.permute.xlu1 %598  ;;  %5626 = vmatprep.subr.mxu1 %v6068_v1  ;;  %v254_v28 = vpop.permute.xlu0 %253  ;;  %5624 = vmatmul.mubr.msk.f32.vlgmr.msra.gmra.mxu1 %vm282_vm7, %v241_v26 }
  0xd5   : > { %v271_v29 = vsel %vm269_vm6, %v254_v28, %v256_v22  ;;  %v270_v30 = vsel %vm269_vm6, %v252_v24, %v254_v28  ;;  %5627 = vmatpush3.msk.msra.mxu1 %vm286_vm5, %v6250_v9  ;;  %5632 = vmatprep.mubr.msk.f32.mxu1 %vm6071_vm4, %v6068_v1  ;;  %v609_v39 = vsel %vm604_vm8, %v599_v27, %v6374_v18 }
  0xd6   : > { %323 = vmatprep.subr.mxu0 %v271_v29  ;;  %5628 = vmatprep.subr.mxu1 %v6068_v1 }
  0xd7   : > { %1710 = vrot.lane.b32.xlu0 %v6068_v1, %s6078_s29  ;;  %324 = vmatpush1.msra.mxu0 %v270_v30 }
  0xd8   : > { %v597_v31 = vpop.permute.xlu1 %596  ;;  %5376 = vmatprep.subr.msk.mxu0 %vm286_vm5, %v6240_v7  ;;  %v603_v32 = vpop.permute.xlu0 %602  ;;  %5373 = vmatmul.mubr.msk.f32.vlgmr.msra.gmra.mxu0 %vm282_vm7, %v241_v26  ;;  %v1143_v26 = vld [vmem:[#allocation6 + $0x28] sm:$0xff] }
  0xd9   : > { %5377 = vmatpush1.msk.msra.mxu0 %vm286_vm5, %v6242_v8  ;;  %5629 = vmatpush3.msra.mxu1 %v6236_v5  ;;  %v610_v37 = vsel %vm604_vm8, %v6374_v18, %v603_v32 }
  0xda   : > { %5630 = vmatprep.subr.mxu1 %v6068_v1  ;;  %1704 = vrot.lane.b32.xlu1 %v6264_v12, %s6078_s29 }
  0xdb   : > { %1708 = vrot.lane.b32.xlu0 %v6068_v1, %s6078_s29  ;;  %471 = vmatprep.subr.mxu0 %v6068_v1 }
  0xdc   : > { %v589_v33 = vpop.permute.xlu1 %588  ;;  %472 = vmatpush1.msra.mxu0 %v6068_v1  ;;  %5631 = vmatpush3.msra.mxu1 %v6254_v10  ;;  %v595_v35 = vpop.permute.xlu0 %594 }
  0xdd   : > { %5635 = vmatprep.subr.mxu1 %v6068_v1  ;;  %473 = vmatprep.subr.mxu0 %v6264_v12  ;;  %v608_v41 = vsel %vm604_vm8, %v595_v35, %v597_v31 }
  0xde   : > { %474 = vmatpush1.msra.mxu0 %v6258_v11  ;;  %5633 = vmatmul.mubr.msk.f32.vlgmr.msra.gmra.mxu1 %vm282_vm7, %v239_v34 }
  0xdf   : > { %5636 = vmatpush3.msk.msra.mxu1 %vm286_vm5, %v603_v32  ;;  %1702 = vrot.lane.b32.xlu1 %v6258_v11, %s6078_s29 }
  0xe0   : > { %v587_v36 = vpop.permute.xlu1 %586  ;;  %1706 = vrot.lane.b32.xlu0 %v6254_v10, %s6078_s29  ;;  %507 = vmatprep.mubr.f32.mxu0 %v6068_v1  ;;  %v593_v38 = vpop.permute.xlu0 %592 }
  0xe1   : > { %5381 = vmatprep.subr.msk.mxu0 %vm286_vm5, %v610_v37  ;;  %5378 = vmatmul.mubr.msk.f32.vlgmr.msra.gmra.mxu0 %vm282_vm7, %v239_v34  ;;  %v607_v40 = vsel %vm604_vm8, %v593_v38, %v595_v35  ;;  %v605_v46 = vsel %vm604_vm8, %v587_v36, %v589_v33 }
  0xe2   : > { %5382 = vmatpush1.msk.msra.mxu0 %vm286_vm5, %v609_v39  ;;  %5637 = vmatprep.subr.mxu1 %v6068_v1 }
  0xe3   : > { %654 = vmatprep.subr.mxu0 %v608_v41  ;;  %5638 = vmatpush3.msra.mxu1 %v597_v31 }
  0xe4   : > { %v789_v42 = vpop.permute.xlu1 %788  ;;  %655 = vmatpush1.msra.mxu0 %v607_v40  ;;  %5639 = vmatprep.subr.mxu1 %v6068_v1  ;;  %v591_v43 = vpop.permute.xlu0 %590 }
  0xe5   : > { %5640 = vmatpush3.msra.mxu1 %v591_v43  ;;  %v606_v45 = vsel %vm604_vm8, %v589_v33, %v591_v43  ;;  %5641 = vmatprep.mubr.msk.f32.mxu1 %vm6071_vm4, %v6068_v1 }
  0xe6   : > { %656 = vmatprep.subr.mxu0 %v606_v45  ;;  %5644 = vmatprep.subr.mxu1 %v6068_v1  ;;  %v1329_v45 = vld [vmem:[#allocation6 + $0x30] sm:$0xff] }
  0xe7   : > { %657 = vmatpush1.msra.mxu0 %v605_v46  ;;  %5642 = vmatmul.mubr.msk.f32.vlgmr.msra.gmra.mxu1 %vm282_vm7, %v585_v44 }
  0xe8   : > { %v781_v47 = vpop.permute.xlu1 %780  ;;  %v787_v48 = vpop.permute.xlu0 %786  ;;  %5645 = vmatpush3.msk.msra.mxu1 %vm286_vm5, %v789_v42  ;;  %690 = vmatprep.mubr.f32.mxu0 %v6068_v1 }
  0xe9   : > { %v796_v49 = vsel %vm790_vm9, %v787_v48, %v789_v42  ;;  %5383 = vmatmul.mubr.msk.f32.vlgmr.msra.gmra.mxu0 %vm282_vm7, %v585_v44  ;;  %5646 = vmatprep.subr.mxu1 %v6068_v1 }
  0xea   : > { %5386 = vmatprep.subr.msk.mxu0 %vm286_vm5, %v796_v49  ;;  %5650 = vmatprep.mubr.msk.f32.mxu1 %vm6071_vm4, %v6068_v1 }
  0xeb   : > { %876 = vmatprep.mubr.f32.mxu0 %v6068_v1 }
  0xec   : > { %v779_v50 = vpop.permute.xlu1 %778  ;;  %v785_v51 = vpop.permute.xlu0 %784 }
  0xed   : > { %v795_v52 = vsel %vm790_vm9, %v785_v51, %v787_v48  ;;  %v793_v57 = vsel %vm790_vm9, %v779_v50, %v781_v47 }
  0xee   : > { %5387 = vmatpush1.msk.msra.mxu0 %vm286_vm5, %v795_v52 }
  0xf0   : > { %v777_v53 = vpop.permute.xlu1 %776  ;;  %v783_v54 = vpop.permute.xlu0 %782 }
  0xf1   : > { %5647 = vmatpush3.msra.mxu1 %v783_v54  ;;  %v794_v55 = vsel %vm790_vm9, %v781_v47, %v783_v54 }
  0xf2   : > { %840 = vmatprep.subr.mxu0 %v794_v55  ;;  %5648 = vmatprep.subr.mxu1 %v6068_v1 }
  0xf3   : > { %841 = vmatpush1.msra.mxu0 %v793_v57  ;;  %5649 = vmatpush3.msra.mxu1 %v777_v53 }
  0xf4   : > { %v973_v58 = vpop.permute.xlu1 %972  ;;  %v775_v59 = vpop.permute.xlu0 %774  ;;  %5653 = vmatprep.subr.mxu1 %v6068_v1  ;;  %5651 = vmatmul.mubr.msk.f32.vlgmr.msra.gmra.mxu1 %vm282_vm7, %v771_v56 }
  0xf5   : > { %v792_v60 = vsel %vm790_vm9, %v775_v59, %v777_v53  ;;  %5659 = vmatprep.mubr.msk.f32.mxu1 %vm6071_vm4, %v6068_v1 }
  0xf6   : > { %842 = vmatprep.subr.mxu0 %v792_v60 }
  0xf8   : > { %v971_v61 = vpop.permute.xlu1 %970  ;;  %v773_v62 = vpop.permute.xlu0 %772 }
  0xf9   : > { %v791_v63 = vsel %vm790_vm9, %v773_v62, %v775_v59  ;;  %v981_v5 = vsel %vm976_vm10, %v971_v61, %v973_v58 }
  0xfa   : > { %843 = vmatpush1.msra.mxu0 %v791_v63 }
  0xfb   : > { %5388 = vmatmul.mubr.msk.f32.vlgmr.msra.gmra.mxu0 %vm282_vm7, %v771_v56 }
  0xfc   : > { %v969_v2 = vpop.permute.xlu1 %968  ;;  %v975_v3 = vpop.permute.xlu0 %974  ;;  %1062 = vmatprep.mubr.f32.mxu0 %v6068_v1 }
  0xfd   : > { %5654 = vmatpush3.msk.msra.mxu1 %vm286_vm5, %v975_v3  ;;  %v982_v4 = vsel %vm976_vm10, %v973_v58, %v975_v3  ;;  %v1515_v58 = vld [vmem:[#allocation6 + $0x38] sm:$0xff] }
  0xfe   : > { %5391 = vmatprep.subr.msk.mxu0 %vm286_vm5, %v982_v4  ;;  %5655 = vmatprep.subr.mxu1 %v6068_v1 }
  0xff   : > { %5392 = vmatpush1.msk.msra.mxu0 %vm286_vm5, %v981_v5  ;;  %5656 = vmatpush3.msra.mxu1 %v969_v2 }
 0x100   : > { %v961_v6 = vpop.permute.xlu1 %960  ;;  %v967_v7 = vpop.permute.xlu0 %966  ;;  %5657 = vmatprep.subr.mxu1 %v6068_v1 }
 0x101   : > { %v980_v8 = vsel %vm976_vm10, %v967_v7, %v969_v2 }
 0x102   : > { %1026 = vmatprep.subr.mxu0 %v980_v8 }
 0x104   : > { %v959_v9 = vpop.permute.xlu1 %958  ;;  %v965_v10 = vpop.permute.xlu0 %964 }
 0x105   : > { %v979_v11 = vsel %vm976_vm10, %v965_v10, %v967_v7  ;;  %v977_v16 = vsel %vm976_vm10, %v959_v9, %v961_v6 }
 0x106   : > { %1027 = vmatpush1.msra.mxu0 %v979_v11 }
 0x108   : > { %v1161_v12 = vpop.permute.xlu1 %1160  ;;  %v963_v13 = vpop.permute.xlu0 %962 }
 0x109   : > { %5658 = vmatpush3.msra.mxu1 %v963_v13  ;;  %v978_v15 = vsel %vm976_vm10, %v961_v6, %v963_v13 }
 0x10a   : > { %1028 = vmatprep.subr.mxu0 %v978_v15  ;;  %5662 = vmatprep.subr.mxu1 %v6068_v1 }
 0x10b   : > { %1029 = vmatpush1.msra.mxu0 %v977_v16  ;;  %5660 = vmatmul.mubr.msk.f32.vlgmr.msra.gmra.mxu1 %vm282_vm7, %v957_v14 }
 0x10c   : > { %v1153_v17 = vpop.permute.xlu1 %1152  ;;  %v1159_v18 = vpop.permute.xlu0 %1158  ;;  %5663 = vmatpush3.msk.msra.mxu1 %vm286_vm5, %v1161_v12  ;;  %5393 = vmatmul.mubr.msk.f32.vlgmr.msra.gmra.mxu0 %vm282_vm7, %v957_v14  ;;  %v1701_v14 = vld [vmem:[#allocation6 + $0x40] sm:$0xff] }
 0x10d   : > { %v1168_v19 = vsel %vm1162_vm11, %v1159_v18, %v1161_v12  ;;  %5664 = vmatprep.subr.mxu1 %v6068_v1  ;;  %5668 = vmatprep.mubr.msk.f32.mxu1 %vm6071_vm4, %v6068_v1 }
 0x10e   : > { %5396 = vmatprep.subr.msk.mxu0 %vm286_vm5, %v1168_v19  ;;  %1248 = vmatprep.mubr.f32.mxu0 %v6068_v1  ;;  %v6554_v19 = vld [vmem:[#allocation2 + $0x40] sm:$0x1f] }
 0x10f   : > { %1974 = vrot.lane.b32.xlu0 %v6554_v19, %s6069_s18 }
 0x110   : > { %v1151_v20 = vpop.permute.xlu1 %1150  ;;  %v1157_v21 = vpop.permute.xlu0 %1156 }
 0x111   : > { %v1167_v22 = vsel %vm1162_vm11, %v1157_v21, %v1159_v18  ;;  %v1165_v27 = vsel %vm1162_vm11, %v1151_v20, %v1153_v17  ;;  %v6552_v18 = vld [vmem:[#allocation2 + $0x38] sm:$0x1f]  ;;  %v6560_v20 = vld [vmem:[#allocation2 + $0x30] sm:$0x1f] }
 0x112   : > { %5397 = vmatpush1.msk.msra.mxu0 %vm286_vm5, %v1167_v22  ;;  %1972 = vrot.lane.b32.xlu1 %v6552_v18, %s6069_s18 }
 0x113   : > { %2304 = vrot.lane.b32.xlu0 %v6552_v18, %s6072_s20 }
 0x114   : > { %v1149_v23 = vpop.permute.xlu1 %1148  ;;  %v1155_v24 = vpop.permute.xlu0 %1154 }
 0x115   : > { %5665 = vmatpush3.msra.mxu1 %v1155_v24  ;;  %v1166_v25 = vsel %vm1162_vm11, %v1153_v17, %v1155_v24 }
 0x116   : > { %1212 = vmatprep.subr.mxu0 %v1166_v25  ;;  %5666 = vmatprep.subr.mxu1 %v6068_v1 }
 0x117   : > { %1213 = vmatpush1.msra.mxu0 %v1165_v27  ;;  %5667 = vmatpush3.msra.mxu1 %v1149_v23 }
 0x118   : > { %v1345_v28 = vpop.permute.xlu1 %1344  ;;  %v1147_v29 = vpop.permute.xlu0 %1146  ;;  %5671 = vmatprep.subr.mxu1 %v6068_v1  ;;  %5669 = vmatmul.mubr.msk.f32.vlgmr.msra.gmra.mxu1 %vm282_vm7, %v1143_v26 }
 0x119   : > { %v1164_v30 = vsel %vm1162_vm11, %v1147_v29, %v1149_v23  ;;  %5677 = vmatprep.mubr.msk.f32.mxu1 %vm6071_vm4, %v6068_v1  ;;  %1970 = vrot.lane.b32.xlu1 %v6560_v20, %s6069_s18 }
 0x11a   : > { %1214 = vmatprep.subr.mxu0 %v1164_v30  ;;  %2302 = vrot.lane.b32.xlu0 %v6560_v20, %s6072_s20 }
 0x11c   : > { %v1343_v31 = vpop.permute.xlu1 %1342  ;;  %v1145_v32 = vpop.permute.xlu0 %1144 }
 0x11d   : > { %v1163_v33 = vsel %vm1162_vm11, %v1145_v32, %v1147_v29  ;;  %v1353_v37 = vsel %vm1348_vm12, %v1343_v31, %v1345_v28  ;;  %2306 = vrot.lane.b32.xlu1 %v6554_v19, %s6072_s20 }
 0x11e   : > { %1215 = vmatpush1.msra.mxu0 %v1163_v33  ;;  %2491 = vrot.lane.b32.xlu0 %v6554_v19, %s6073_s10 }
 0x11f   : > { %5398 = vmatmul.mubr.msk.f32.vlgmr.msra.gmra.mxu0 %vm282_vm7, %v1143_v26 }
 0x120   : > { %v1341_v34 = vpop.permute.xlu1 %1340  ;;  %v1347_v35 = vpop.permute.xlu0 %1346  ;;  %1434 = vmatprep.mubr.f32.mxu0 %v6068_v1 }
 0x121   : > { %5672 = vmatpush3.msk.msra.mxu1 %vm286_vm5, %v1347_v35  ;;  %v1354_v36 = vsel %vm1348_vm12, %v1345_v28, %v1347_v35  ;;  %2489 = vrot.lane.b32.xlu1 %v6552_v18, %s6073_s10 }
 0x122   : > { %5401 = vmatprep.subr.msk.mxu0 %vm286_vm5, %v1354_v36  ;;  %5673 = vmatprep.subr.mxu1 %v6068_v1 }
 0x123   : > { %5402 = vmatpush1.msk.msra.mxu0 %vm286_vm5, %v1353_v37  ;;  %5674 = vmatpush3.msra.mxu1 %v1341_v34 }
 0x124   : > { %v1333_v38 = vpop.permute.xlu1 %1332  ;;  %v1339_v39 = vpop.permute.xlu0 %1338  ;;  %5675 = vmatprep.subr.mxu1 %v6068_v1  ;;  %2674 = vrot.lane.b32.xlu0 %v6552_v18, %s6074_s21 }
 0x125   : > { %v1352_v40 = vsel %vm1348_vm12, %v1339_v39, %v1341_v34  ;;  %2487 = vrot.lane.b32.xlu1 %v6560_v20, %s6073_s10 }
 0x126   : > { %1398 = vmatprep.subr.mxu0 %v1352_v40 }
 0x128   : > { %v1331_v41 = vpop.permute.xlu1 %1330  ;;  %v1337_v42 = vpop.permute.xlu0 %1336  ;;  %2672 = vrot.lane.b32.xlu0 %v6560_v20, %s6074_s21 }
 0x129   : > { %v1351_v43 = vsel %vm1348_vm12, %v1337_v42, %v1339_v39  ;;  %v1349_v48 = vsel %vm1348_vm12, %v1331_v41, %v1333_v38  ;;  %2676 = vrot.lane.b32.xlu1 %v6554_v19, %s6074_s21 }
 0x12a   : > { %1399 = vmatpush1.msra.mxu0 %v1351_v43 }
 0x12c   : > { %v1533_v44 = vpop.permute.xlu1 %1532  ;;  %v1335_v46 = vpop.permute.xlu0 %1334 }
 0x12d   : > { %5676 = vmatpush3.msra.mxu1 %v1335_v46  ;;  %v1350_v47 = vsel %vm1348_vm12, %v1333_v38, %v1335_v46 }
 0x12e   : > { %1400 = vmatprep.subr.mxu0 %v1350_v47  ;;  %5678 = vmatmul.mubr.msk.f32.vlgmr.msra.gmra.mxu1 %vm282_vm7, %v1329_v45 }
 0x12f   : > { %1401 = vmatpush1.msra.mxu0 %v1349_v48  ;;  %5680 = vmatprep.subr.mxu1 %v6068_v1 }
 0x130   : > { %v1525_v49 = vpop.permute.xlu1 %1524  ;;  %5403 = vmatmul.mubr.msk.f32.vlgmr.msra.gmra.mxu0 %vm282_vm7, %v1329_v45  ;;  %v1531_v50 = vpop.permute.xlu0 %1530  ;;  %5681 = vmatpush3.msk.msra.mxu1 %vm286_vm5, %v1533_v44 }
 0x131   : > { %v1540_v51 = vsel %vm1534_vm13, %v1531_v50, %v1533_v44  ;;  %5682 = vmatprep.subr.mxu1 %v6068_v1  ;;  %5686 = vmatprep.mubr.msk.f32.mxu1 %vm6071_vm4, %v6068_v1 }
 0x132   : > { %5406 = vmatprep.subr.msk.mxu0 %vm286_vm5, %v1540_v51  ;;  %1620 = vmatprep.mubr.f32.mxu0 %v6068_v1 }
 0x134   : > { %v1523_v52 = vpop.permute.xlu1 %1522  ;;  %v1529_v53 = vpop.permute.xlu0 %1528 }
 0x135   : > { %v1539_v54 = vsel %vm1534_vm13, %v1529_v53, %v1531_v50  ;;  %v1537_v59 = vsel %vm1534_vm13, %v1523_v52, %v1525_v49 }
 0x136   : > { %5407 = vmatpush1.msk.msra.mxu0 %vm286_vm5, %v1539_v54 }
 0x138   : > { %v1521_v55 = vpop.permute.xlu1 %1520  ;;  %v1527_v56 = vpop.permute.xlu0 %1526 }
 0x139   : > { %5683 = vmatpush3.msra.mxu1 %v1527_v56  ;;  %v1538_v57 = vsel %vm1534_vm13, %v1525_v49, %v1527_v56 }
 0x13a   : > { %1584 = vmatprep.subr.mxu0 %v1538_v57  ;;  %5684 = vmatprep.subr.mxu1 %v6068_v1 }
 0x13b   : > { %1585 = vmatpush1.msra.mxu0 %v1537_v59  ;;  %5685 = vmatpush3.msra.mxu1 %v1521_v55 }
 0x13c   : > { %v1717_v60 = vpop.permute.xlu1 %1716  ;;  %v1519_v61 = vpop.permute.xlu0 %1518  ;;  %5687 = vmatmul.mubr.msk.f32.vlgmr.msra.gmra.mxu1 %vm282_vm7, %v1515_v58  ;;  %5689 = vmatprep.subr.mxu1 %v6068_v1 }
 0x13d   : > { %v1536_v62 = vsel %vm1534_vm13, %v1519_v61, %v1521_v55  ;;  %5695 = vmatprep.mubr.msk.f32.mxu1 %vm6071_vm4, %v6068_v1 }
 0x13e   : > { %1586 = vmatprep.subr.mxu0 %v1536_v62 }
 0x140   : > { %v1715_v63 = vpop.permute.xlu1 %1714 }
 0x141   : > { %v1517_v2 = vpop.permute.xlu0 %1516  ;;  %v1725_v7 = vsel %vm1720_vm14, %v1715_v63, %v1717_v60 }
 0x142   : > { %v1535_v3 = vsel %vm1534_vm13, %v1517_v2, %v1519_v61 }
 0x143   : > { %1587 = vmatpush1.msra.mxu0 %v1535_v3 }
 0x144   : > { %5408 = vmatmul.mubr.msk.f32.vlgmr.msra.gmra.mxu0 %vm282_vm7, %v1515_v58 }
 0x145   : > { %v1719_v4 = vpop.permute.xlu0 %1718  ;;  %1806 = vmatprep.mubr.f32.mxu0 %v6068_v1  ;;  %v1713_v6 = vpop.permute.xlu1 %1712 }
 0x146   : > { %5690 = vmatpush3.msk.msra.mxu1 %vm286_vm5, %v1719_v4  ;;  %v1726_v5 = vsel %vm1720_vm14, %v1717_v60, %v1719_v4  ;;  %v1891_v4 = vshrl.u32 %v222_v0, 7 }
 0x147   : > { %5411 = vmatprep.subr.msk.mxu0 %vm286_vm5, %v1726_v5  ;;  %5691 = vmatprep.subr.mxu1 %v6068_v1 }
 0x148   : > { %5412 = vmatpush1.msk.msra.mxu0 %vm286_vm5, %v1725_v7  ;;  %5692 = vmatpush3.msra.mxu1 %v1713_v6 }
 0x149   : > { %v1711_v8 = vpop.permute.xlu0 %1710  ;;  %5693 = vmatprep.subr.mxu1 %v6068_v1 }
 0x14a   : > { %v1724_v9 = vsel %vm1720_vm14, %v1711_v8, %v1713_v6 }
 0x14b   : > { %1770 = vmatprep.subr.mxu0 %v1724_v9 }
 0x14c   : > { %v1705_v10 = vpop.permute.xlu1 %1704 }
 0x14d   : > { %v1709_v11 = vpop.permute.xlu0 %1708 }
 0x14e   : > { %v1723_v12 = vsel %vm1720_vm14, %v1709_v11, %v1711_v8 }
 0x14f   : > { %1771 = vmatpush1.msra.mxu0 %v1723_v12 }
 0x151   : > { %v1703_v13 = vpop.permute.xlu1 %1702 }
 0x152   : > { %v1707_v15 = vpop.permute.xlu0 %1706  ;;  %v1721_v17 = vsel %vm1720_vm14, %v1703_v13, %v1705_v10  ;;  %v229_v13 = vld [vmem:[%s7489_s2] sm:$0x7] }
 0x153   : > { %5694 = vmatpush3.msra.mxu1 %v1707_v15  ;;  %v1722_v16 = vsel %vm1720_vm14, %v1705_v10, %v1707_v15  ;;  %v1900_v10 = vsub.s32 2, %v1891_v4 }
 0x154   : > { %1772 = vmatprep.subr.mxu0 %v1722_v16  ;;  %5696 = vmatmul.mubr.msk.f32.vlgmr.msra.gmra.mxu1 %vm282_vm7, %v1701_v14  ;;  %v1892_v16 = vsub.s32 0, %v1891_v4 }
 0x155   : > { %1773 = vmatpush1.msra.mxu0 %v1721_v17  ;;  %5698 = vmatprep.subr.mxu1 %v6068_v1 }
 0x156   : > { %5413 = vmatmul.mubr.msk.f32.vlgmr.msra.gmra.mxu0 %vm282_vm7, %v1701_v14  ;;  %5704 = vmatprep.mubr.msk.f32.mxu1 %vm6071_vm4, %v6068_v1 }
 0x157   : > { %2061 = vmatprep.mubr.f32.mxu0 %v6068_v1 }
 0x181   : > { %v1975_v46 = vpop.permute.xlu0 %1974 }
 0x182   : > { %5699 = vmatpush3.msk.msra.mxu1 %vm286_vm5, %v1975_v46 }
 0x183   : > { %5700 = vmatprep.subr.mxu1 %v6068_v1 }
 0x184   : > { %v1973_v45 = vpop.permute.xlu1 %1972 }
 0x185   : > { %v1981_v48 = vsel %vm269_vm6, %v1973_v45, %v1975_v46 }
 0x186   : > { %5416 = vmatprep.subr.msk.mxu0 %vm286_vm5, %v1981_v48 }
 0x18b   : > { %v1971_v49 = vpop.permute.xlu1 %1970 }
 0x18c   : > { %v1980_v51 = vsel %vm269_vm6, %v1971_v49, %v1973_v45 }
 0x18d   : > { %5417 = vmatpush1.msk.msra.mxu0 %vm286_vm5, %v1980_v51 }
 0x18f   : > { %v6632_v45 = vpop.permute.xlu1 %2306 }
 0x194   : > { %v430_v21 = vpop.f32.mrf.mxu1 }
 0x196   : > { %v5625_v22 = vpop.f32.mrf.mxu1 }
 0x197   : > { %v6592_v22 = vrot.slane %v229_v13, %v1900_v10 }
 0x198   : > { %v359_v36 = vpop.f32.mrf.mxu0 }
 0x19a   : > { %v361_v38 = vpop.f32.mrf.mxu0 }
 0x19e   : > { %v580_v23 = vpop.f32.mrf.mxu1 }
 0x19f   : > { %v581_v24 = vadd.f32 %v580_v23, %v430_v21 }
 0x1a0   : > { %v5634_v25 = vpop.f32.mrf.mxu1 }
 0x1a1   : > { %v509_v39 = vpop.f32.mrf.mxu0  ;;  %v1896_v25 = vsub.s32 1, %v1891_v4 }
 0x1a2   : > { %v510_v56 = vadd.f32 %v509_v39, %v359_v36 }
 0x1a3   : > { %v511_v40 = vpop.f32.mrf.mxu0  ;;  %v6597_v36 = vrot.slane %v229_v13, %v1896_v25 }
 0x1a4   : > { %v512_v57 = vadd.f32 %v511_v40, %v361_v38 }
 0x1a7   : > { %v763_v26 = vpop.f32.mrf.mxu1 }
 0x1a8   : > { %v769_v27 = vadd.f32 %v763_v26, %v581_v24 }
 0x1a9   : > { %v5643_v28 = vpop.f32.mrf.mxu1  ;;  %v692_v41 = vpop.f32.mrf.mxu0 }
 0x1aa   : > { %v767_v59 = vadd.f32 %v692_v41, %v510_v56 }
 0x1ab   : > { %v694_v42 = vpop.f32.mrf.mxu0 }
 0x1ac   : > { %v768_v60 = vadd.f32 %v694_v42, %v512_v57 }
 0x1b4   : > { %v949_v29 = vpop.f32.mrf.mxu1 }
 0x1b5   : > { %v955_v30 = vadd.f32 %v949_v29, %v769_v27 }
 0x1b6   : > { %v5652_v31 = vpop.f32.mrf.mxu1 }
 0x1b7   : > { %v6594_v31 = vrot.slane %v229_v13, %v1892_v16 }
 0x1bb   : > { %v878_v47 = vpop.f32.mrf.mxu0 }
 0x1bc   : > { %v953_v62 = vadd.f32 %v878_v47, %v767_v59  ;;  %v6636_v47 = vpop.permute.xlu1 %2489 }
 0x1bd   : > { %v880_v50 = vpop.f32.mrf.mxu0 }
 0x1be   : > { %v954_v63 = vadd.f32 %v880_v50, %v768_v60 }
 0x1c0   : > { %v6640_v49 = vpop.permute.xlu1 %2487 }
 0x1c4   : > { %v6644_v51 = vpop.permute.xlu1 %2676 }
 0x1cb   : > { %v1135_v32 = vpop.f32.mrf.mxu1 }
 0x1cc   : > { %v1141_v33 = vadd.f32 %v1135_v32, %v955_v30  ;;  %v1064_v52 = vpop.f32.mrf.mxu0 }
 0x1cd   : > { %v5661_v34 = vpop.f32.mrf.mxu1  ;;  %v1139_v3 = vadd.f32 %v1064_v52, %v953_v62 }
 0x1ce   : > { %v1066_v54 = vpop.f32.mrf.mxu0 }
 0x1cf   : > { %v1140_v5 = vadd.f32 %v1066_v54, %v954_v63 }
 0x1d8   : > { %v1321_v35 = vpop.f32.mrf.mxu1 }
 0x1d9   : > { %v1327_v6 = vadd.f32 %v1321_v35, %v1141_v33 }
 0x1da   : > { %v5670_v37 = vpop.f32.mrf.mxu1 }
 0x1df   : > { %v1250_v58 = vpop.f32.mrf.mxu0 }
 0x1e0   : > { %v1325_v8 = vadd.f32 %v1250_v58, %v1139_v3 }
 0x1e1   : > { %v1252_v61 = vpop.f32.mrf.mxu0 }
 0x1e2   : > { %v1326_v11 = vadd.f32 %v1252_v61, %v1140_v5 }
 0x1ee   : > { %v1507_v43 = vpop.f32.mrf.mxu1 }
 0x1ef   : > { %v1513_v12 = vadd.f32 %v1507_v43, %v1327_v6  ;;  %v6628_v43 = vpop.permute.xlu0 %2304 }
 0x1f0   : > { %v5679_v44 = vpop.f32.mrf.mxu1  ;;  %v1436_v2 = vpop.f32.mrf.mxu0 }
 0x1f1   : > { %v1511_v14 = vadd.f32 %v1436_v2, %v1325_v8 }
 0x1f2   : > { %v1438_v7 = vpop.f32.mrf.mxu0 }
 0x1f3   : > { %v1512_v0 = vadd.f32 %v1438_v7, %v1326_v11  ;;  %v6630_v44 = vpop.permute.xlu0 %2302 }
 0x1f7   : > { %v6634_v46 = vpop.permute.xlu0 %2491 }
 0x1fb   : > { %v6638_v48 = vpop.permute.xlu0 %2674 }
 0x1fc   : > { %v1693_v53 = vpop.f32.mrf.mxu1 }
 0x1fd   : > { %v1699_v15 = vadd.f32 %v1693_v53, %v1513_v12 }
 0x1fe   : > { %v5688_v55 = vpop.f32.mrf.mxu1 }
 0x1ff   : > { %v6642_v50 = vpop.permute.xlu0 %2672 }
 0x204   : > { %v1622_v9 = vpop.f32.mrf.mxu0 }
 0x205   : > { %v1697_v23 = vadd.f32 %v1622_v9, %v1511_v14 }
 0x206   : > { %v1624_v17 = vpop.f32.mrf.mxu0 }
 0x207   : > { %v1698_v28 = vadd.f32 %v1624_v17, %v1512_v0 }
 0x214   : > { %v1879_v21 = vpop.f32.mrf.mxu1 }
 0x215   : > { %v1885_v24 = vadd.f32 %v1879_v21, %v1699_v15 }
 0x216   : > { %v1808_v26 = vpop.f32.mrf.mxu0  ;;  %v5697_v27 = vpop.f32.mrf.mxu1 }
 0x217   : > { %v1888_v29 = vmax.f32 %v1885_v24, 0.0  ;;  %v1883_v30 = vadd.f32 %v1808_v26, %v1697_v23 }
 0x218   : > { %v1810_v32 = vpop.f32.mrf.mxu0 }
 0x219   : > { %v1907_v33 = vmul.f32 %v6592_v22, %v1888_v29  ;;  %v1886_v34 = vmax.f32 %v1883_v30, 0.0  ;;  %v1884_v35 = vadd.f32 %v1810_v32, %v1698_v28 }
 0x21b   : > { %v1913_v37 = vrot.slane %v1907_v33, 4  ;;  %v1905_v38 = vmul.f32 %v6594_v31, %v1886_v34  ;;  %v1887_v39 = vmax.f32 %v1884_v35, 0.0 }
 0x21d   : > { %v1906_v40 = vmul.f32 %v6597_v36, %v1887_v39  ;;  %1918 = vrot.lane.b32.xlu0 %v1913_v37, %s6079_s8  ;;  %v1911_v41 = vrot.slane %v1905_v38, 4  ;;  %v1948_v37 = vld [vmem:[#allocation6 + $0x50] sm:$0xff] }
 0x21f   : > { %v1912_v42 = vrot.slane %v1906_v40, 4 }
 0x221   : > { %1914 = vrot.lane.b32.xlu0 %v1911_v41, %s6079_s8  ;;  %1916 = vrot.lane.b32.xlu1 %v1912_v42, %s6079_s8 }
 0x225   : > { %2859 = vrot.lane.b32.xlu1 %v6552_v18, %s6075_s23  ;;  %2861 = vrot.lane.b32.xlu0 %v6554_v19, %s6075_s23 }
 0x229   : > { %2857 = vrot.lane.b32.xlu1 %v6560_v20, %s6075_s23  ;;  %3044 = vrot.lane.b32.xlu0 %v6552_v18, %s6076_s25 }
 0x22d   : > { %3046 = vrot.lane.b32.xlu1 %v6554_v19, %s6076_s25  ;;  %3042 = vrot.lane.b32.xlu0 %v6560_v20, %s6076_s25 }
 0x231   : > { %3229 = vrot.lane.b32.xlu1 %v6552_v18, %s6077_s28  ;;  %3231 = vrot.lane.b32.xlu0 %v6554_v19, %s6077_s28 }
 0x235   : > { %3227 = vrot.lane.b32.xlu1 %v6560_v20, %s6077_s28  ;;  %3414 = vrot.lane.b32.xlu0 %v6552_v18, %s6078_s29 }
 0x239   : > { %3412 = vrot.lane.b32.xlu0 %v6560_v20, %s6078_s29  ;;  %3416 = vrot.lane.b32.xlu1 %v6554_v19, %s6078_s29 }
 0x28f   : > { %v1919_v52 = vpop.permute.xlu0 %1918 }
 0x293   : > { %v1917_v53 = vpop.permute.xlu1 %1916  ;;  %v1915_v54 = vpop.permute.xlu0 %1914 }
 0x294   : > { %v1922_v55 = vsel %vm1920_vm15, %v1917_v53, %v1919_v52  ;;  %v1921_v56 = vsel %vm1920_vm15, %v1915_v54, %v1917_v53  ;;  %1927 = vst.msk [vmem:[#allocation2] sm:$0xf0] %vm1926_vm0, %v1915_v54  ;;  %v1946_v53 = vld [vmem:[#allocation6 + $0x48] sm:$0xff] }
 0x295   : > { %1932 = vst.msk [vmem:[#allocation2 + $0x18] sm:$0xf] %vm1931_vm1, %v1915_v54  ;;  %1928 = vst [vmem:[#allocation2 + $0x20] ss:$-20 sps:$4 sm:$0xff] %v1921_v56  }
 0x296   : > { %1930 = vst.msk [vmem:[#allocation2 + $0x10] sm:$0xf0] %vm1929_vm2, %v1922_v55 }
 0x297   : > { %1935 = vst.msk [vmem:[#allocation2 + $0x28] sm:$0xf] %vm1934_vm3, %v1922_v55  ;;  %v6744_v63 = vpop.permute.xlu0 %2861  ;;  %v6750_v2 = vpop.permute.xlu1 %2859  ;;  %v2312_v55 = vsel %vm604_vm8, %v6630_v44, %v6628_v43 }
 0x29b   : > { %v6654_v58 = vld [vmem:[#allocation2] sm:$0xff]  ;;  %v6756_v3 = vpop.permute.xlu0 %3044  ;;  %v6758_v4 = vpop.permute.xlu1 %2857 }
 0x29c   : > { %v6652_v57 = vld [vmem:[#allocation2 + $0x18] sm:$0xff]  ;;  %1958 = vrot.lane.b32.xlu1 %v6654_v58, %s6069_s18  ;;  %v6684_v59 = vld [vmem:[#allocation2 + $0x20] sm:$0xff]  ;;  %v6698_v62 = vld [vmem:[#allocation2 + $0x8] sm:$0xff] }
 0x29d   : > { %1964 = vrot.lane.b32.xlu0 %v6652_v57, %s6069_s18  ;;  %v6692_v61 = vld [vmem:[#allocation2 + $0x10] sm:$0xff] }
 0x29e   : > { %v6690_v60 = vld [vmem:[#allocation2 + $0x28] sm:$0xff] }
 0x29f   : > { %v6764_v5 = vpop.permute.xlu0 %3042  ;;  %v6770_v6 = vpop.permute.xlu1 %3046 }
 0x2a0   : > { %2296 = vrot.lane.b32.xlu1 %v6652_v57, %s6072_s20 }
 0x2a1   : > { %2290 = vrot.lane.b32.xlu0 %v6654_v58, %s6072_s20 }
 0x2a3   : > { %v6776_v7 = vpop.permute.xlu0 %3231  ;;  %v6778_v8 = vpop.permute.xlu1 %3229 }
 0x2a4   : > { %2475 = vrot.lane.b32.xlu1 %v6654_v58, %s6073_s10 }
 0x2a5   : > { %2481 = vrot.lane.b32.xlu0 %v6652_v57, %s6073_s10 }
 0x2a7   : > { %v6784_v9 = vpop.permute.xlu0 %3414  ;;  %v6786_v10 = vpop.permute.xlu1 %3227 }
 0x2a8   : > { %2666 = vrot.lane.b32.xlu1 %v6652_v57, %s6074_s21 }
 0x2a9   : > { %2660 = vrot.lane.b32.xlu0 %v6654_v58, %s6074_s21 }
 0x2ab   : > { %v6796_v11 = vpop.permute.xlu1 %3416  ;;  %v6798_v12 = vpop.permute.xlu0 %3412 }
 0x2ac   : > { %2845 = vrot.lane.b32.xlu1 %v6654_v58, %s6075_s23 }
 0x2ad   : > { %2851 = vrot.lane.b32.xlu0 %v6652_v57, %s6075_s23 }
 0x2b0   : > { %3036 = vrot.lane.b32.xlu1 %v6652_v57, %s6076_s25 }
 0x2b1   : > { %3030 = vrot.lane.b32.xlu0 %v6654_v58, %s6076_s25 }
 0x2b4   : > { %3215 = vrot.lane.b32.xlu1 %v6654_v58, %s6077_s28 }
 0x2b5   : > { %3221 = vrot.lane.b32.xlu0 %v6652_v57, %s6077_s28 }
 0x2b8   : > { %3406 = vrot.lane.b32.xlu1 %v6652_v57, %s6078_s29 }
 0x2b9   : > { %1966 = vrot.lane.b32.xlu0 %v6684_v59, %s6069_s18 }
 0x2bc   : > { %1968 = vrot.lane.b32.xlu1 %v6690_v60, %s6069_s18 }
 0x2bd   : > { %1962 = vrot.lane.b32.xlu0 %v6692_v61, %s6069_s18 }
 0x2c0   : > { %1960 = vrot.lane.b32.xlu1 %v6698_v62, %s6069_s18 }
 0x2c1   : > { %2300 = vrot.lane.b32.xlu0 %v6690_v60, %s6072_s20 }
 0x2c4   : > { %2298 = vrot.lane.b32.xlu1 %v6684_v59, %s6072_s20 }
 0x2c5   : > { %2292 = vrot.lane.b32.xlu0 %v6698_v62, %s6072_s20 }
 0x2c8   : > { %2294 = vrot.lane.b32.xlu1 %v6692_v61, %s6072_s20 }
 0x2c9   : > { %2483 = vrot.lane.b32.xlu0 %v6684_v59, %s6073_s10 }
 0x2cc   : > { %2485 = vrot.lane.b32.xlu1 %v6690_v60, %s6073_s10 }
 0x2cd   : > { %2479 = vrot.lane.b32.xlu0 %v6692_v61, %s6073_s10 }
 0x2d0   : > { %2477 = vrot.lane.b32.xlu1 %v6698_v62, %s6073_s10 }
 0x2d1   : > { %2670 = vrot.lane.b32.xlu0 %v6690_v60, %s6074_s21 }
 0x2d4   : > { %2668 = vrot.lane.b32.xlu1 %v6684_v59, %s6074_s21 }
 0x2d5   : > { %2662 = vrot.lane.b32.xlu0 %v6698_v62, %s6074_s21 }
 0x2d8   : > { %2664 = vrot.lane.b32.xlu1 %v6692_v61, %s6074_s21 }
 0x2d9   : > { %2853 = vrot.lane.b32.xlu0 %v6684_v59, %s6075_s23 }
 0x2dc   : > { %2855 = vrot.lane.b32.xlu1 %v6690_v60, %s6075_s23 }
 0x2dd   : > { %2849 = vrot.lane.b32.xlu0 %v6692_v61, %s6075_s23 }
 0x2e0   : > { %2847 = vrot.lane.b32.xlu1 %v6698_v62, %s6075_s23 }
 0x2e1   : > { %3040 = vrot.lane.b32.xlu0 %v6690_v60, %s6076_s25 }
 0x2e4   : > { %3038 = vrot.lane.b32.xlu1 %v6684_v59, %s6076_s25 }
 0x2e5   : > { %3032 = vrot.lane.b32.xlu0 %v6698_v62, %s6076_s25 }
 0x2e8   : > { %3034 = vrot.lane.b32.xlu1 %v6692_v61, %s6076_s25 }
 0x2e9   : > { %3223 = vrot.lane.b32.xlu0 %v6684_v59, %s6077_s28 }
 0x2ec   : > { %3225 = vrot.lane.b32.xlu1 %v6690_v60, %s6077_s28 }
 0x2ed   : > { %3219 = vrot.lane.b32.xlu0 %v6692_v61, %s6077_s28 }
 0x2f0   : > { %3217 = vrot.lane.b32.xlu1 %v6698_v62, %s6077_s28 }
 0x2f1   : > { %3410 = vrot.lane.b32.xlu0 %v6690_v60, %s6078_s29 }
 0x2f4   : > { %3408 = vrot.lane.b32.xlu1 %v6684_v59, %s6078_s29 }
 0x2f5   : > { %3402 = vrot.lane.b32.xlu0 %v6698_v62, %s6078_s29 }
 0x2f8   : > { %3404 = vrot.lane.b32.xlu1 %v6692_v61, %s6078_s29 }
 0x2f9   : > { %3400 = vrot.lane.b32.xlu0 %v6654_v58, %s6078_s29 }
 0x2fc   : > { %3966 = vrot.lane.b32.xlu1 %v6654_v58, %s6072_s20 }
 0x2fd   : > { %3634 = vrot.lane.b32.xlu0 %v6654_v58, %s6069_s18 }
 0x300   : > { %4336 = vrot.lane.b32.xlu1 %v6654_v58, %s6074_s21 }
 0x301   : > { %4151 = vrot.lane.b32.xlu0 %v6654_v58, %s6073_s10 }
 0x304   : > { %3638 = vrot.lane.b32.xlu1 %v6692_v61, %s6069_s18 }
 0x305   : > { %3636 = vrot.lane.b32.xlu0 %v6698_v62, %s6069_s18 }
 0x308   : > { %3968 = vrot.lane.b32.xlu1 %v6698_v62, %s6072_s20 }
 0x309   : > { %3970 = vrot.lane.b32.xlu0 %v6692_v61, %s6072_s20 }
 0x30c   : > { %4155 = vrot.lane.b32.xlu1 %v6692_v61, %s6073_s10 }
 0x30d   : > { %4153 = vrot.lane.b32.xlu0 %v6698_v62, %s6073_s10 }
 0x30e   : > { %v1959_v13 = vpop.permute.xlu1 %1958 }
 0x30f   : > { %v1965_v14 = vpop.permute.xlu0 %1964 }
 0x310   : > { %4338 = vrot.lane.b32.xlu1 %v6698_v62, %s6074_s21 }
 0x311   : > { %4340 = vrot.lane.b32.xlu0 %v6692_v61, %s6074_s21 }
 0x312   : > { %v6808_v15 = vpop.permute.xlu1 %2296 }
 0x313   : > { %v6810_v16 = vpop.permute.xlu0 %2290 }
 0x316   : > { %v6812_v17 = vpop.permute.xlu1 %2475 }
 0x317   : > { %v6814_v21 = vpop.permute.xlu0 %2481 }
 0x31a   : > { %v6816_v0 = vpop.permute.xlu1 %2666 }
 0x31b   : > { %v6818_v23 = vpop.permute.xlu0 %2660 }
 0x31e   : > { %v6820_v24 = vpop.permute.xlu1 %2845 }
 0x31f   : > { %v6822_v25 = vpop.permute.xlu0 %2851 }
 0x322   : > { %v6824_v26 = vpop.permute.xlu1 %3036 }
 0x323   : > { %v6826_v27 = vpop.permute.xlu0 %3030 }
 0x326   : > { %v6828_v28 = vpop.permute.xlu1 %3215 }
 0x327   : > { %v6830_v29 = vpop.permute.xlu0 %3221 }
 0x32a   : > { %v6832_v30 = vpop.permute.xlu1 %3406 }
 0x32b   : > { %v1967_v32 = vpop.permute.xlu0 %1966 }
 0x32c   : > { %v1978_v38 = vsel %vm269_vm6, %v1965_v14, %v1967_v32 }
 0x32e   : > { %v1969_v33 = vpop.permute.xlu1 %1968 }
 0x32f   : > { %v1963_v34 = vpop.permute.xlu0 %1962  ;;  %5701 = vmatpush3.msra.mxu1 %v1969_v33  ;;  %v1979_v35 = vsel %vm269_vm6, %v1967_v32, %v1969_v33  ;;  %v2474_v32 = vld [vmem:[#allocation6 + $0x60] sm:$0xff] }
 0x330   : > { %2025 = vmatprep.subr.mxu0 %v1979_v35  ;;  %5702 = vmatprep.subr.mxu1 %v6068_v1 }
 0x331   : > { %2026 = vmatpush1.msra.mxu0 %v1978_v38  ;;  %5703 = vmatpush3.msra.mxu1 %v1963_v34 }
 0x332   : > { %v1961_v39 = vpop.permute.xlu1 %1960  ;;  %5707 = vmatprep.subr.mxu1 %v6068_v1  ;;  %5705 = vmatmul.mubr.msk.f32.vlgmr.msra.gmra.mxu1 %vm282_vm7, %v1948_v37 }
 0x333   : > { %v2301_v40 = vpop.permute.xlu0 %2300  ;;  %5708 = vmatpush3.msk.msra.mxu1 %vm286_vm5, %v6554_v19  ;;  %v1977_v41 = vsel %vm269_vm6, %v1961_v39, %v1963_v34  ;;  %v1976_v42 = vsel %vm269_vm6, %v1959_v13, %v1961_v39  ;;  %5713 = vmatprep.mubr.msk.f32.mxu1 %vm6071_vm4, %v6068_v1  ;;  %v2682_v39 = vsel %vm976_vm10, %v6642_v50, %v6638_v48 }
 0x334   : > { %2027 = vmatprep.subr.mxu0 %v1977_v41  ;;  %5709 = vmatprep.subr.mxu1 %v6068_v1 }
 0x335   : > { %2028 = vmatpush1.msra.mxu0 %v1976_v42  ;;  %5710 = vmatpush3.msra.mxu1 %v6690_v60 }
 0x336   : > { %v2299_v52 = vpop.permute.xlu1 %2298  ;;  %5421 = vmatprep.subr.msk.mxu0 %vm286_vm5, %v6552_v18  ;;  %5711 = vmatprep.subr.mxu1 %v6068_v1 }
 0x337   : > { %v2293_v19 = vpop.permute.xlu0 %2292  ;;  %5418 = vmatmul.mubr.msk.f32.vlgmr.msra.gmra.mxu0 %vm282_vm7, %v1948_v37  ;;  %5712 = vmatpush3.msra.mxu1 %v6692_v61  ;;  %v2310_v60 = vsel %vm604_vm8, %v6808_v15, %v2299_v52  ;;  %v2498_v15 = vsel %vm790_vm9, %v6636_v47, %v6634_v46 }
 0x338   : > { %5422 = vmatpush1.msk.msra.mxu0 %vm286_vm5, %v6560_v20  ;;  %5716 = vmatprep.subr.mxu1 %v6068_v1  ;;  %v2313_v20 = vsel %vm604_vm8, %v6628_v43, %v6632_v45  ;;  %v2308_v44 = vsel %vm604_vm8, %v6810_v16, %v2293_v19  ;;  %v2497_v16 = vsel %vm790_vm9, %v6640_v49, %v6636_v47 }
 0x339   : > { %2175 = vmatprep.subr.mxu0 %v6684_v59  ;;  %5714 = vmatmul.mubr.msk.f32.vlgmr.msra.gmra.mxu1 %vm282_vm7, %v1946_v53  ;;  %v2311_v59 = vsel %vm604_vm8, %v2299_v52, %v2301_v40 }
 0x33a   : > { %2176 = vmatpush1.msra.mxu0 %v6652_v57  ;;  %5717 = vmatpush3.msk.msra.mxu1 %vm286_vm5, %v6632_v45  ;;  %v2295_v18 = vpop.permute.xlu1 %2294  ;;  %v2289_v45 = vld [vmem:[#allocation6 + $0x58] sm:$0xff] }
 0x33b   : > { %v2484_v54 = vpop.permute.xlu0 %2483  ;;  %2177 = vmatprep.subr.mxu0 %v6698_v62  ;;  %5718 = vmatprep.subr.mxu1 %v6068_v1  ;;  %v2309_v43 = vsel %vm604_vm8, %v2293_v19, %v2295_v18 }
 0x33c   : > { %2178 = vmatpush1.msra.mxu0 %v6654_v58  ;;  %5719 = vmatpush3.msra.mxu1 %v2301_v40 }
 0x33d   : > { %2211 = vmatprep.mubr.f32.mxu0 %v6068_v1  ;;  %5426 = vmatprep.subr.msk.mxu0 %vm286_vm5, %v2313_v20 }
 0x33e   : > { %5720 = vmatprep.subr.mxu1 %v6068_v1  ;;  %5423 = vmatmul.mubr.msk.f32.vlgmr.msra.gmra.mxu0 %vm282_vm7, %v1946_v53  ;;  %v2486_v56 = vpop.permute.xlu1 %2485 }
 0x33f   : > { %v2480_v57 = vpop.permute.xlu0 %2479  ;;  %5427 = vmatpush1.msk.msra.mxu0 %vm286_vm5, %v2312_v55  ;;  %5721 = vmatpush3.msra.mxu1 %v2295_v18  ;;  %v2496_v35 = vsel %vm790_vm9, %v2484_v54, %v2486_v56 }
 0x340   : > { %2357 = vmatprep.subr.mxu0 %v2311_v59  ;;  %5722 = vmatprep.mubr.msk.f32.mxu1 %vm6071_vm4, %v6068_v1 }
 0x341   : > { %5725 = vmatprep.subr.mxu1 %v6068_v1  ;;  %2358 = vmatpush1.msra.mxu0 %v2310_v60 }
 0x342   : > { %5723 = vmatmul.mubr.msk.f32.vlgmr.msra.gmra.mxu1 %vm282_vm7, %v2289_v45  ;;  %2359 = vmatprep.subr.mxu0 %v2309_v43  ;;  %v2478_v13 = vpop.permute.xlu1 %2477 }
 0x343   : > { %v2671_v14 = vpop.permute.xlu0 %2670  ;;  %5726 = vmatpush3.msk.msra.mxu1 %vm286_vm5, %v6634_v46  ;;  %2360 = vmatpush1.msra.mxu0 %v2308_v44  ;;  %v2495_v46 = vsel %vm790_vm9, %v6814_v21, %v2484_v54  ;;  %v2494_v47 = vsel %vm790_vm9, %v2478_v13, %v2480_v57  ;;  %v2493_v38 = vsel %vm790_vm9, %v6812_v17, %v2478_v13  ;;  %v2659_v17 = vld [vmem:[#allocation6 + $0x68] sm:$0xff] }
 0x344   : > { %5727 = vmatprep.subr.mxu1 %v6068_v1  ;;  %2393 = vmatprep.mubr.f32.mxu0 %v6068_v1  ;;  %v2683_v21 = vsel %vm976_vm10, %v6638_v48, %v6644_v51  ;;  %v3238_v44 = vsel %vm1534_vm13, %v6778_v8, %v6776_v7 }
 0x345   : > { %5728 = vmatpush3.msra.mxu1 %v2486_v56  ;;  %5428 = vmatmul.mubr.msk.f32.vlgmr.msra.gmra.mxu0 %vm282_vm7, %v2289_v45  ;;  %v3029_v45 = vld [vmem:[#allocation6 + $0x78] sm:$0xff] }
 0x346   : > { %5431 = vmatprep.subr.msk.mxu0 %vm286_vm5, %v2498_v15  ;;  %5729 = vmatprep.subr.mxu1 %v6068_v1  ;;  %v2669_v33 = vpop.permute.xlu1 %2668 }
 0x347   : > { %v2663_v34 = vpop.permute.xlu0 %2662  ;;  %5432 = vmatpush1.msk.msra.mxu0 %vm286_vm5, %v2497_v16  ;;  %5730 = vmatpush3.msra.mxu1 %v2480_v57  ;;  %v2681_v42 = vsel %vm976_vm10, %v2669_v33, %v2671_v14  ;;  %v3052_v57 = vsel %vm1348_vm12, %v6764_v5, %v6756_v3 }
 0x348   : > { %5731 = vmatprep.mubr.msk.f32.mxu1 %vm6071_vm4, %v6068_v1  ;;  %2542 = vmatprep.subr.mxu0 %v2496_v35  ;;  %v2678_v48 = vsel %vm976_vm10, %v6818_v23, %v2663_v34  ;;  %v2867_v23 = vsel %vm1162_vm11, %v6758_v4, %v6750_v2 }
 0x349   : > { %5732 = vmatmul.mubr.msk.f32.vlgmr.msra.gmra.mxu1 %vm282_vm7, %v2474_v32  ;;  %5734 = vmatprep.subr.mxu1 %v6068_v1 }
 0x34a   : > { %2543 = vmatpush1.msra.mxu0 %v2495_v46  ;;  %5735 = vmatpush3.msk.msra.mxu1 %vm286_vm5, %v6644_v51  ;;  %v2665_v49 = vpop.permute.xlu1 %2664  ;;  %v2680_v51 = vsel %vm976_vm10, %v6816_v0, %v2669_v33  ;;  %v2868_v0 = vsel %vm1162_vm11, %v6750_v2, %v6744_v63  ;;  %v3399_v46 = vld [vmem:[#allocation6 + $0x88] sm:$0xff] }
 0x34b   : > { %v2854_v37 = vpop.permute.xlu0 %2853  ;;  %2544 = vmatprep.subr.mxu0 %v2494_v47  ;;  %5736 = vmatprep.subr.mxu1 %v6068_v1  ;;  %v2679_v52 = vsel %vm976_vm10, %v2663_v34, %v2665_v49  ;;  %v3422_v34 = vsel %vm1720_vm14, %v6798_v12, %v6784_v9 }
 0x34c   : > { %2545 = vmatpush1.msra.mxu0 %v2493_v38  ;;  %2578 = vmatprep.mubr.f32.mxu0 %v6068_v1  ;;  %v2865_v20 = vsel %vm1162_vm11, %v6822_v25, %v2854_v37 }
 0x34d   : > { %5737 = vmatpush3.msra.mxu1 %v2671_v14  ;;  %5433 = vmatmul.mubr.msk.f32.vlgmr.msra.gmra.mxu0 %vm282_vm7, %v2474_v32 }
 0x34e   : > { %5436 = vmatprep.subr.msk.mxu0 %vm286_vm5, %v2683_v21  ;;  %5738 = vmatprep.subr.mxu1 %v6068_v1  ;;  %v2856_v40 = vpop.permute.xlu1 %2855 }
 0x34f   : > { %v2850_v41 = vpop.permute.xlu0 %2849  ;;  %5437 = vmatpush1.msk.msra.mxu0 %vm286_vm5, %v2682_v39  ;;  %5739 = vmatpush3.msra.mxu1 %v2665_v49  ;;  %v2866_v53 = vsel %vm1162_vm11, %v2854_v37, %v2856_v40 }
 0x350   : > { %2727 = vmatprep.subr.mxu0 %v2681_v42  ;;  %5740 = vmatprep.mubr.msk.f32.mxu1 %vm6071_vm4, %v6068_v1 }
 0x351   : > { %2728 = vmatpush1.msra.mxu0 %v2680_v51  ;;  %5741 = vmatmul.mubr.msk.f32.vlgmr.msra.gmra.mxu1 %vm282_vm7, %v2659_v17 }
 0x352   : > { %2729 = vmatprep.subr.mxu0 %v2679_v52  ;;  %5743 = vmatprep.subr.mxu1 %v6068_v1  ;;  %v2848_v50 = vpop.permute.xlu1 %2847 }
 0x353   : > { %v3041_v19 = vpop.permute.xlu0 %3040  ;;  %2730 = vmatpush1.msra.mxu0 %v2678_v48  ;;  %2763 = vmatprep.mubr.f32.mxu0 %v6068_v1  ;;  %v2864_v55 = vsel %vm1162_vm11, %v2848_v50, %v2850_v41  ;;  %v2863_v2 = vsel %vm1162_vm11, %v6820_v24, %v2848_v50  ;;  %v3053_v24 = vsel %vm1348_vm12, %v6756_v3, %v6770_v6 }
 0x354   : > { %5744 = vmatpush3.msk.msra.mxu1 %vm286_vm5, %v6744_v63  ;;  %5438 = vmatmul.mubr.msk.f32.vlgmr.msra.gmra.mxu0 %vm282_vm7, %v2659_v17  ;;  %v2844_v63 = vld [vmem:[#allocation6 + $0x70] sm:$0xff] }
 0x355   : > { %5441 = vmatprep.subr.msk.mxu0 %vm286_vm5, %v2868_v0  ;;  %5745 = vmatprep.subr.mxu1 %v6068_v1 }
 0x356   : > { %5442 = vmatpush1.msk.msra.mxu0 %vm286_vm5, %v2867_v23  ;;  %5746 = vmatpush3.msra.mxu1 %v2856_v40  ;;  %v3039_v18 = vpop.permute.xlu1 %3038 }
 0x357   : > { %v3033_v54 = vpop.permute.xlu0 %3032  ;;  %2912 = vmatprep.subr.mxu0 %v2866_v53  ;;  %5747 = vmatprep.subr.mxu1 %v6068_v1  ;;  %v3051_v56 = vsel %vm1348_vm12, %v3039_v18, %v3041_v19  ;;  %v3050_v59 = vsel %vm1348_vm12, %v6824_v26, %v3039_v18 }
 0x358   : > { %2913 = vmatpush1.msra.mxu0 %v2865_v20  ;;  %5748 = vmatpush3.msra.mxu1 %v2850_v41  ;;  %v3048_v3 = vsel %vm1348_vm12, %v6826_v27, %v3033_v54  ;;  %v3237_v27 = vsel %vm1534_vm13, %v6786_v10, %v6778_v8 }
 0x359   : > { %5749 = vmatprep.mubr.msk.f32.mxu1 %vm6071_vm4, %v6068_v1  ;;  %5752 = vmatprep.subr.mxu1 %v6068_v1 }
 0x35a   : > { %5750 = vmatmul.mubr.msk.f32.vlgmr.msra.gmra.mxu1 %vm282_vm7, %v2844_v63  ;;  %2914 = vmatprep.subr.mxu0 %v2864_v55  ;;  %v3035_v4 = vpop.permute.xlu1 %3034 }
 0x35b   : > { %v3224_v25 = vpop.permute.xlu0 %3223  ;;  %5753 = vmatpush3.msk.msra.mxu1 %vm286_vm5, %v6770_v6  ;;  %2915 = vmatpush1.msra.mxu0 %v2863_v2  ;;  %v3049_v6 = vsel %vm1348_vm12, %v3033_v54, %v3035_v4 }
 0x35c   : > { %5754 = vmatprep.subr.mxu1 %v6068_v1  ;;  %2948 = vmatprep.mubr.f32.mxu0 %v6068_v1  ;;  %v3235_v16 = vsel %vm1534_vm13, %v6830_v29, %v3224_v25 }
 0x35d   : > { %5755 = vmatpush3.msra.mxu1 %v3041_v19  ;;  %5443 = vmatmul.mubr.msk.f32.vlgmr.msra.gmra.mxu0 %vm282_vm7, %v2844_v63 }
 0x35e   : > { %5446 = vmatprep.subr.msk.mxu0 %vm286_vm5, %v3053_v24  ;;  %5756 = vmatprep.subr.mxu1 %v6068_v1  ;;  %v3226_v60 = vpop.permute.xlu1 %3225 }
 0x35f   : > { %v3220_v43 = vpop.permute.xlu0 %3219  ;;  %5447 = vmatpush1.msk.msra.mxu0 %vm286_vm5, %v3052_v57  ;;  %5757 = vmatpush3.msra.mxu1 %v3035_v4  ;;  %v3236_v13 = vsel %vm1534_vm13, %v3224_v25, %v3226_v60 }
 0x360   : > { %3097 = vmatprep.subr.mxu0 %v3051_v56  ;;  %5758 = vmatprep.mubr.msk.f32.mxu1 %vm6071_vm4, %v6068_v1 }
 0x361   : > { %3098 = vmatpush1.msra.mxu0 %v3050_v59  ;;  %5759 = vmatmul.mubr.msk.f32.vlgmr.msra.gmra.mxu1 %vm282_vm7, %v3029_v45 }
 0x362   : > { %3099 = vmatprep.subr.mxu0 %v3049_v6  ;;  %5761 = vmatprep.subr.mxu1 %v6068_v1  ;;  %v3218_v5 = vpop.permute.xlu1 %3217 }
 0x363   : > { %v3411_v26 = vpop.permute.xlu0 %3410  ;;  %3100 = vmatpush1.msra.mxu0 %v3048_v3  ;;  %3133 = vmatprep.mubr.f32.mxu0 %v6068_v1  ;;  %v3234_v32 = vsel %vm1534_vm13, %v3218_v5, %v3220_v43  ;;  %v3233_v8 = vsel %vm1534_vm13, %v6828_v28, %v3218_v5  ;;  %v3423_v28 = vsel %vm1720_vm14, %v6784_v9, %v6796_v11 }
 0x364   : > { %5762 = vmatpush3.msk.msra.mxu1 %vm286_vm5, %v6776_v7  ;;  %5448 = vmatmul.mubr.msk.f32.vlgmr.msra.gmra.mxu0 %vm282_vm7, %v3029_v45  ;;  %v3214_v7 = vld [vmem:[#allocation6 + $0x80] sm:$0xff] }
 0x365   : > { %5451 = vmatprep.subr.msk.mxu0 %vm286_vm5, %v3238_v44  ;;  %5763 = vmatprep.subr.mxu1 %v6068_v1 }
 0x366   : > { %5452 = vmatpush1.msk.msra.mxu0 %vm286_vm5, %v3237_v27  ;;  %5764 = vmatpush3.msra.mxu1 %v3226_v60  ;;  %v3409_v14 = vpop.permute.xlu1 %3408 }
 0x367   : > { %v3403_v15 = vpop.permute.xlu0 %3402  ;;  %3282 = vmatprep.subr.mxu0 %v3236_v13  ;;  %5765 = vmatprep.subr.mxu1 %v6068_v1  ;;  %v3421_v33 = vsel %vm1720_vm14, %v3409_v14, %v3411_v26  ;;  %v3420_v35 = vsel %vm1720_vm14, %v6832_v30, %v3409_v14 }
 0x368   : > { %3283 = vmatpush1.msra.mxu0 %v3235_v16  ;;  %5766 = vmatpush3.msra.mxu1 %v3220_v43 }
 0x369   : > { %5767 = vmatprep.mubr.msk.f32.mxu1 %vm6071_vm4, %v6068_v1  ;;  %5770 = vmatprep.subr.mxu1 %v6068_v1 }
 0x36a   : > { %5768 = vmatmul.mubr.msk.f32.vlgmr.msra.gmra.mxu1 %vm282_vm7, %v3214_v7  ;;  %3284 = vmatprep.subr.mxu0 %v3234_v32  ;;  %v3405_v10 = vpop.permute.xlu1 %3404 }
 0x36b   : > { %v3401_v29 = vpop.permute.xlu0 %3400  ;;  %5771 = vmatpush3.msk.msra.mxu1 %vm286_vm5, %v6796_v11  ;;  %3285 = vmatpush1.msra.mxu0 %v3233_v8  ;;  %v3419_v11 = vsel %vm1720_vm14, %v3403_v15, %v3405_v10 }
 0x36c   : > { %5772 = vmatprep.subr.mxu1 %v6068_v1  ;;  %3318 = vmatprep.mubr.f32.mxu0 %v6068_v1  ;;  %v3418_v37 = vsel %vm1720_vm14, %v3401_v29, %v3403_v15 }
 0x36d   : > { %5773 = vmatpush3.msra.mxu1 %v3411_v26  ;;  %5453 = vmatmul.mubr.msk.f32.vlgmr.msra.gmra.mxu0 %vm282_vm7, %v3214_v7 }
 0x36e   : > { %5456 = vmatprep.subr.msk.mxu0 %vm286_vm5, %v3423_v28  ;;  %5774 = vmatprep.subr.mxu1 %v6068_v1  ;;  %v3967_v47 = vpop.permute.xlu1 %3966 }
 0x36f   : > { %v3635_v49 = vpop.permute.xlu0 %3634  ;;  %5457 = vmatpush1.msk.msra.mxu0 %vm286_vm5, %v3422_v34  ;;  %5775 = vmatpush3.msra.mxu1 %v3405_v10 }
 0x370   : > { %3467 = vmatprep.subr.mxu0 %v3421_v33  ;;  %5776 = vmatprep.mubr.msk.f32.mxu1 %vm6071_vm4, %v6068_v1 }
 0x371   : > { %3468 = vmatpush1.msra.mxu0 %v3420_v35  ;;  %5777 = vmatmul.mubr.msk.f32.vlgmr.msra.gmra.mxu1 %vm282_vm7, %v3399_v46 }
 0x372   : > { %3469 = vmatprep.subr.mxu0 %v3419_v11  ;;  %3503 = vmatprep.mubr.f32.mxu0 %v6068_v1  ;;  %v7027_v9 = vpop.permute.xlu1 %4336 }
 0x373   : > { %v4152_v12 = vpop.permute.xlu0 %4151  ;;  %3470 = vmatpush1.msra.mxu0 %v3418_v37  ;;  %5779 = vmatprep.subr.mxu1 %v6068_v1 }
 0x374   : > { %5458 = vmatmul.mubr.msk.f32.vlgmr.msra.gmra.mxu0 %vm282_vm7, %v3399_v46  ;;  %5785 = vmatprep.mubr.msk.f32.mxu1 %vm6071_vm4, %v6068_v1 }
 0x375   : > { %3737 = vmatprep.mubr.f32.mxu0 %v6068_v1 }
 0x376   : > { %v7034_v30 = vpop.permute.xlu1 %3638 }
 0x377   : > { %v7036_v38 = vpop.permute.xlu0 %3636 }
 0x378   : > { %v7040_v21 = vsel %vm269_vm6, %v3635_v49, %v7036_v38 }
 0x37a   : > { %v7042_v39 = vpop.permute.xlu1 %3968 }
 0x37b   : > { %v7044_v17 = vpop.permute.xlu0 %3970  ;;  %v7048_v40 = vsel %vm604_vm8, %v3967_v47, %v7042_v39 }
 0x37f   : > { %v7050_v41 = vpop.permute.xlu0 %4153 }
 0x380   : > { %v7054_v42 = vsel %vm790_vm9, %v4152_v12, %v7050_v41 }
 0x3f2   : > { %v2134_v52 = vpop.f32.mrf.mxu1 }
 0x3f4   : > { %v5706_v51 = vpop.f32.mrf.mxu1 }
 0x3f7   : > { %v2063_v19 = vpop.f32.mrf.mxu0 }
 0x3f9   : > { %v2284_v48 = vpop.f32.mrf.mxu1  ;;  %v2065_v53 = vpop.f32.mrf.mxu0 }
 0x3fa   : > { %v2285_v6 = vadd.f32 %v2284_v48, %v2134_v52 }
 0x3fb   : > { %v5715_v50 = vpop.f32.mrf.mxu1 }
 0x3fe   : > { %v2213_v18 = vpop.f32.mrf.mxu0 }
 0x3ff   : > { %v2214_v26 = vadd.f32 %v2213_v18, %v2063_v19 }
 0x400   : > { %v2215_v63 = vpop.f32.mrf.mxu0 }
 0x401   : > { %v2216_v27 = vadd.f32 %v2215_v63, %v2065_v53 }
 0x402   : > { %v2466_v0 = vpop.f32.mrf.mxu1 }
 0x403   : > { %v2472_v44 = vadd.f32 %v2466_v0, %v2285_v6 }
 0x404   : > { %v5724_v23 = vpop.f32.mrf.mxu1 }
 0x405   : > { %v2395_v55 = vpop.f32.mrf.mxu0 }
 0x406   : > { %v2470_v16 = vadd.f32 %v2395_v55, %v2214_v26 }
 0x407   : > { %v2397_v25 = vpop.f32.mrf.mxu0 }
 0x408   : > { %v2471_v8 = vadd.f32 %v2397_v25, %v2216_v27 }
 0x409   : > { %v2651_v54 = vpop.f32.mrf.mxu1 }
 0x40a   : > { %v2657_v14 = vadd.f32 %v2651_v54, %v2472_v44 }
 0x40b   : > { %v5733_v20 = vpop.f32.mrf.mxu1 }
 0x40d   : > { %v2580_v24 = vpop.f32.mrf.mxu0 }
 0x40e   : > { %v2655_v10 = vadd.f32 %v2580_v24, %v2470_v16 }
 0x40f   : > { %v2582_v56 = vpop.f32.mrf.mxu0 }
 0x410   : > { %v2656_v34 = vadd.f32 %v2582_v56, %v2471_v8 }
 0x411   : > { %v2836_v2 = vpop.f32.mrf.mxu1 }
 0x412   : > { %v2842_v7 = vadd.f32 %v2836_v2, %v2657_v14 }
 0x413   : > { %v5742_v4 = vpop.f32.mrf.mxu1 }
 0x414   : > { %v2765_v59 = vpop.f32.mrf.mxu0 }
 0x415   : > { %v2840_v35 = vadd.f32 %v2765_v59, %v2655_v10 }
 0x416   : > { %v2767_v60 = vpop.f32.mrf.mxu0 }
 0x417   : > { %v2841_v49 = vadd.f32 %v2767_v60, %v2656_v34  ;;  %v7082_v60 = vpop.permute.xlu1 %4155 }
 0x41a   : > { %v3021_v57 = vpop.f32.mrf.mxu1 }
 0x41b   : > { %v3027_v29 = vadd.f32 %v3021_v57, %v2842_v7 }
 0x41c   : > { %v5751_v45 = vpop.f32.mrf.mxu1 }
 0x41d   : > { %v2950_v3 = vpop.f32.mrf.mxu0 }
 0x41e   : > { %v3025_v11 = vadd.f32 %v2950_v3, %v2840_v35  ;;  %v7086_v3 = vpop.permute.xlu0 %4340 }
 0x41f   : > { %v2952_v13 = vpop.f32.mrf.mxu0 }
 0x420   : > { %v3026_v12 = vadd.f32 %v2952_v13, %v2841_v49 }
 0x421   : > { %v3206_v43 = vpop.f32.mrf.mxu1 }
 0x422   : > { %v3212_v46 = vadd.f32 %v3206_v43, %v3027_v29  ;;  %v7084_v43 = vpop.permute.xlu1 %4338 }
 0x423   : > { %v5760_v5 = vpop.f32.mrf.mxu1 }
 0x424   : > { %v3135_v15 = vpop.f32.mrf.mxu0 }
 0x425   : > { %v3210_v52 = vadd.f32 %v3135_v15, %v3025_v11 }
 0x426   : > { %v3137_v28 = vpop.f32.mrf.mxu0 }
 0x427   : > { %v3211_v19 = vadd.f32 %v3137_v28, %v3026_v12 }
 0x42a   : > { %v3391_v32 = vpop.f32.mrf.mxu1 }
 0x42b   : > { %v3397_v37 = vadd.f32 %v3391_v32, %v3212_v46 }
 0x42c   : > { %v5769_v33 = vpop.f32.mrf.mxu1 }
 0x42d   : > { %v3320_v47 = vpop.f32.mrf.mxu0 }
 0x42e   : > { %v3395_v0 = vadd.f32 %v3320_v47, %v3210_v52 }
 0x42f   : > { %v3322_v48 = vpop.f32.mrf.mxu0 }
 0x430   : > { %v3396_v54 = vadd.f32 %v3322_v48, %v3211_v19 }
 0x431   : > { %v3576_v51 = vpop.f32.mrf.mxu1 }
 0x432   : > { %v3582_v50 = vadd.f32 %v3576_v51, %v3397_v37 }
 0x433   : > { %v5778_v53 = vpop.f32.mrf.mxu1 }
 0x434   : > { %v3585_v23 = vmax.f32 %v3582_v50, 0.0  ;;  %v3505_v18 = vpop.f32.mrf.mxu0 }
 0x435   : > { %v3580_v20 = vadd.f32 %v3505_v18, %v3395_v0 }
 0x436   : > { %v3588_v63 = vmul.f32 %v3585_v23, %v6592_v22  ;;  %v3507_v55 = vpop.f32.mrf.mxu0 }
 0x437   : > { %v3583_v2 = vmax.f32 %v3580_v20, 0.0  ;;  %v3581_v4 = vadd.f32 %v3507_v55, %v3396_v54 }
 0x438   : > { %v3594_v25 = vrot.slane %v3588_v63, 4 }
 0x439   : > { %v3586_v24 = vmul.f32 %v3583_v2, %v6594_v31  ;;  %v3584_v56 = vmax.f32 %v3581_v4, 0.0 }
 0x43a   : > { %3599 = vrot.lane.b32.xlu1 %v3594_v25, %s6079_s8 }
 0x43b   : > { %v3587_v57 = vmul.f32 %v3584_v56, %v6597_v36  ;;  %v3592_v59 = vrot.slane %v3586_v24, 4 }
 0x43d   : > { %v3593_v45 = vrot.slane %v3587_v57, 4 }
 0x43e   : > { %3595 = vrot.lane.b32.xlu1 %v3592_v59, %s6079_s8 }
 0x43f   : > { %3597 = vrot.lane.b32.xlu0 %v3593_v45, %s6079_s8  ;;  %v3624_v45 = vld [vmem:[#allocation6 + $0x98] sm:$0xff] }
 0x442   : > { %4525 = vrot.lane.b32.xlu1 %v6692_v61, %s6075_s23 }
 0x443   : > { %4523 = vrot.lane.b32.xlu0 %v6698_v62, %s6075_s23 }
 0x446   : > { %4708 = vrot.lane.b32.xlu1 %v6698_v62, %s6076_s25 }
 0x447   : > { %4521 = vrot.lane.b32.xlu0 %v6654_v58, %s6075_s23 }
 0x44a   : > { %4706 = vrot.lane.b32.xlu1 %v6654_v58, %s6076_s25 }
 0x44b   : > { %4710 = vrot.lane.b32.xlu0 %v6692_v61, %s6076_s25 }
 0x44e   : > { %4895 = vrot.lane.b32.xlu1 %v6692_v61, %s6077_s28 }
 0x44f   : > { %4893 = vrot.lane.b32.xlu0 %v6698_v62, %s6077_s28 }
 0x452   : > { %5078 = vrot.lane.b32.xlu1 %v6698_v62, %s6078_s29 }
 0x453   : > { %4891 = vrot.lane.b32.xlu0 %v6654_v58, %s6077_s28 }
 0x4ac   : > { %v3600_v6 = vpop.permute.xlu1 %3599 }
 0x4b0   : > { %v3596_v5 = vpop.permute.xlu1 %3595 }
 0x4b1   : > { %3606 = vst.msk [vmem:[#allocation2 + $0x18] sm:$0xf0] %vm1926_vm0, %v3596_v5  ;;  %v3598_v26 = vpop.permute.xlu0 %3597 }
 0x4b2   : > { %3609 = vst.msk [vmem:[#allocation2 + $0x30] sm:$0xf] %vm1931_vm1, %v3596_v5  ;;  %v3601_v44 = vsel %vm1920_vm15, %v3596_v5, %v3598_v26  ;;  %v3602_v62 = vsel %vm1920_vm15, %v3598_v26, %v3600_v6  ;;  %v3653_v6 = vsel %vm269_vm6, %v7036_v38, %v7034_v30 }
 0x4b3   : > { %3607 = vst [vmem:[#allocation2 + $0x38] ss:$-20 sps:$4 sm:$0xff] %v3601_v44   ;;  %3608 = vst.msk [vmem:[#allocation2 + $0x28] sm:$0xf0] %vm1929_vm2, %v3602_v62  ;;  %v3622_v44 = vld [vmem:[#allocation6 + $0x90] sm:$0xff] }
 0x4b4   : > { %3611 = vst.msk [vmem:[#allocation2 + $0x40] sm:$0xf] %vm1934_vm3, %v3602_v62  ;;  %v7094_v13 = vpop.permute.xlu1 %4525  ;;  %v5938_v62 = vld [vmem:[#allocation2 + $0x8] sm:$0xff] }
 0x4b5   : > { %v7096_v27 = vpop.permute.xlu0 %4523 }
 0x4b8   : > { %v7098_v14 = vpop.permute.xlu1 %4708  ;;  %v7100_v15 = vld [vmem:[#allocation2 + $0x18] sm:$0xff] }
 0x4b9   : > { %v7102_v16 = vld [vmem:[#allocation2 + $0x30] sm:$0x1f]  ;;  %v4522_v7 = vpop.permute.xlu0 %4521  ;;  %3640 = vrot.lane.b32.xlu1 %v7100_v15, %s6069_s18 }
 0x4ba   : > { %3646 = vrot.lane.b32.xlu0 %v7102_v16, %s6069_s18  ;;  %v7110_v32 = vsel %vm1162_vm11, %v4522_v7, %v7096_v27  ;;  %v7146_v28 = vld [vmem:[#allocation2 + $0x38] sm:$0x1f]  ;;  %v7152_v33 = vld [vmem:[#allocation2 + $0x28] sm:$0xff]  ;;  %v7154_v34 = vld [vmem:[#allocation2 + $0x20] sm:$0xff] }
 0x4bb   : > { %v7144_v29 = vld [vmem:[#allocation2 + $0x40] sm:$0x1f] }
 0x4bc   : > { %v4707_v8 = vpop.permute.xlu1 %4706 }
 0x4bd   : > { %v7114_v10 = vsel %vm1348_vm12, %v4707_v8, %v7098_v14  ;;  %3978 = vrot.lane.b32.xlu1 %v7102_v16, %s6072_s20  ;;  %v7220_v35 = vpop.permute.xlu0 %4710 }
 0x4be   : > { %3972 = vrot.lane.b32.xlu0 %v7100_v15, %s6072_s20 }
 0x4c0   : > { %v7222_v46 = vpop.permute.xlu1 %4895 }
 0x4c1   : > { %4157 = vrot.lane.b32.xlu1 %v7100_v15, %s6073_s10  ;;  %v7224_v47 = vpop.permute.xlu0 %4893 }
 0x4c2   : > { %4163 = vrot.lane.b32.xlu0 %v7102_v16, %s6073_s10 }
 0x4c4   : > { %v7226_v49 = vpop.permute.xlu1 %5078 }
 0x4c5   : > { %4348 = vrot.lane.b32.xlu1 %v7102_v16, %s6074_s21  ;;  %v7228_v11 = vpop.permute.xlu0 %4891 }
 0x4c6   : > { %4342 = vrot.lane.b32.xlu0 %v7100_v15, %s6074_s21 }
 0x4c9   : > { %4527 = vrot.lane.b32.xlu1 %v7100_v15, %s6075_s23 }
 0x4ca   : > { %4533 = vrot.lane.b32.xlu0 %v7102_v16, %s6075_s23 }
 0x4cd   : > { %4718 = vrot.lane.b32.xlu1 %v7102_v16, %s6076_s25 }
 0x4ce   : > { %4712 = vrot.lane.b32.xlu0 %v7100_v15, %s6076_s25 }
 0x4d1   : > { %4897 = vrot.lane.b32.xlu1 %v7100_v15, %s6077_s28 }
 0x4d2   : > { %4903 = vrot.lane.b32.xlu0 %v7102_v16, %s6077_s28 }
 0x4d5   : > { %5088 = vrot.lane.b32.xlu1 %v7102_v16, %s6078_s29 }
 0x4d6   : > { %5082 = vrot.lane.b32.xlu0 %v7100_v15, %s6078_s29 }
 0x4d9   : > { %3650 = vrot.lane.b32.xlu1 %v7144_v29, %s6069_s18 }
 0x4da   : > { %3648 = vrot.lane.b32.xlu0 %v7146_v28, %s6069_s18 }
 0x4dd   : > { %3642 = vrot.lane.b32.xlu1 %v7154_v34, %s6069_s18 }
 0x4de   : > { %3644 = vrot.lane.b32.xlu0 %v7152_v33, %s6069_s18  ;;  %s5282_s18 = scalar_lea.hbm %s7490_s3, %s5864_s9 }
 0x4e1   : > { %3980 = vrot.lane.b32.xlu1 %v7146_v28, %s6072_s20 }
 0x4e2   : > { %3982 = vrot.lane.b32.xlu0 %v7144_v29, %s6072_s20 }
 0x4e5   : > { %3976 = vrot.lane.b32.xlu1 %v7152_v33, %s6072_s20 }
 0x4e6   : > { %3974 = vrot.lane.b32.xlu0 %v7154_v34, %s6072_s20  ;;  %s5270_s20 = scalar_lea.sflag [#allocation5], %s6208_s17 }
 0x4e9   : > { %4167 = vrot.lane.b32.xlu1 %v7144_v29, %s6073_s10 }
 0x4ea   : > { %4165 = vrot.lane.b32.xlu0 %v7146_v28, %s6073_s10 }
 0x4ed   : > { %4159 = vrot.lane.b32.xlu1 %v7154_v34, %s6073_s10 }
 0x4ee   : > { %4161 = vrot.lane.b32.xlu0 %v7152_v33, %s6073_s10  ;;  %s5994_s10 = scalar_lea.vmem %s5285_s22, 384 }
 0x4ef   : > { %p5995_p8 = scmp.ne.s32.totalorder %s5285_s22, %s5994_s10 }
 0x4f1   : > { %4350 = vrot.lane.b32.xlu1 %v7146_v28, %s6074_s21  ;;  %p5996_p5 = pnand %p5995_p8, %p7506_p3 }
 0x4f2   : > { %4352 = vrot.lane.b32.xlu0 %v7144_v29, %s6074_s21 }
 0x4f3   : > { %p5997_p7 = pneg %p5996_p5 }
 0x4f5   : > { %4346 = vrot.lane.b32.xlu1 %v7152_v33, %s6074_s21 }
 0x4f6   : > { %4344 = vrot.lane.b32.xlu0 %v7154_v34, %s6074_s21  ;;  %s5998_s21 = sshll.u32 %s6080_s16, 4  ;;  %s5999_s21 = int_to_ptr.vmem [resolvable:$false] %s5998_s21 }
 0x4f7   : > { %p6001_p10 = scmp.lt.s32.totalorder %s5285_s22, %s5999_s21 }
 0x4f9   : > { %4537 = vrot.lane.b32.xlu1 %v7144_v29, %s6075_s23 }
 0x4fa   : > { %4535 = vrot.lane.b32.xlu0 %v7146_v28, %s6075_s23 }
 0x4fd   : > { %4529 = vrot.lane.b32.xlu1 %v7154_v34, %s6075_s23 }
 0x4fe   : > { %4531 = vrot.lane.b32.xlu0 %v7152_v33, %s6075_s23  ;;  %s6000_s23 = scalar_lea.vmem %s5999_s21, 768 }
 0x4ff   : > { %p6002_p2 = scmp.lt.s32.totalorder %s6000_s23, %s5994_s10 }
 0x501   : > { %4720 = vrot.lane.b32.xlu1 %v7146_v28, %s6076_s25  ;;  %p6003_p13 = por %p6002_p2, %p6001_p10 }
 0x502   : > { %4722 = vrot.lane.b32.xlu0 %v7144_v29, %s6076_s25 }
 0x503   : > { %p6004_p0 = pnand %p6003_p13, %p5997_p7 }
 0x505   : > { %4716 = vrot.lane.b32.xlu1 %v7152_v33, %s6076_s25 }
 0x506   : > { %4714 = vrot.lane.b32.xlu0 %v7154_v34, %s6076_s25 }
 0x509   : > { %4907 = vrot.lane.b32.xlu1 %v7144_v29, %s6077_s28 }
 0x50a   : > { %4905 = vrot.lane.b32.xlu0 %v7146_v28, %s6077_s28 }
 0x50d   : > { %4899 = vrot.lane.b32.xlu1 %v7154_v34, %s6077_s28 }
 0x50e   : > { %4901 = vrot.lane.b32.xlu0 %v7152_v33, %s6077_s28 }
 0x511   : > { %5090 = vrot.lane.b32.xlu1 %v7146_v28, %s6078_s29 }
 0x512   : > { %5092 = vrot.lane.b32.xlu0 %v7144_v29, %s6078_s29 }
 0x515   : > { %5086 = vrot.lane.b32.xlu1 %v7152_v33, %s6078_s29 }
 0x516   : > { %5084 = vrot.lane.b32.xlu0 %v7154_v34, %s6078_s29 }
 0x519   : > { %5076 = vrot.lane.b32.xlu1 %v6654_v58, %s6078_s29 }
 0x51a   : > { %5080 = vrot.lane.b32.xlu0 %v6692_v61, %s6078_s29 }
 0x52b   : > { %v3641_v37 = vpop.permute.xlu1 %3640 }
 0x52c   : > { %v3647_v12 = vpop.permute.xlu0 %3646 }
 0x52f   : > { %v7230_v52 = vpop.permute.xlu1 %3978 }
 0x530   : > { %v7232_v51 = vpop.permute.xlu0 %3972 }
 0x533   : > { %v7234_v61 = vpop.permute.xlu1 %4157 }
 0x534   : > { %v7236_v48 = vpop.permute.xlu0 %4163 }
 0x537   : > { %v7238_v58 = vpop.permute.xlu1 %4348 }
 0x538   : > { %v7240_v50 = vpop.permute.xlu0 %4342 }
 0x53b   : > { %v7242_v19 = vpop.permute.xlu1 %4527 }
 0x53c   : > { %v7244_v0 = vpop.permute.xlu0 %4533 }
 0x53f   : > { %v7246_v53 = vpop.permute.xlu1 %4718 }
 0x540   : > { %v7248_v23 = vpop.permute.xlu0 %4712 }
 0x543   : > { %v7250_v18 = vpop.permute.xlu1 %4897 }
 0x544   : > { %v7252_v54 = vpop.permute.xlu0 %4903 }
 0x547   : > { %v7254_v20 = vpop.permute.xlu1 %5088 }
 0x548   : > { %v7256_v63 = vpop.permute.xlu0 %5082 }
 0x54b   : > { %v3651_v55 = vpop.permute.xlu1 %3650 }
 0x54c   : > { %v3649_v2 = vpop.permute.xlu0 %3648  ;;  %5780 = vmatpush3.msk.msra.mxu1 %vm286_vm5, %v3651_v55 }
 0x54d   : > { %v3656_v4 = vsel %vm269_vm6, %v3647_v12, %v3649_v2  ;;  %v3657_v25 = vsel %vm269_vm6, %v3649_v2, %v3651_v55  ;;  %5781 = vmatprep.subr.mxu1 %v6068_v1  ;;  %v3985_v12 = vsel %vm604_vm8, %v7042_v39, %v7044_v17 }
 0x54e   : > { %5461 = vmatprep.subr.msk.mxu0 %vm286_vm5, %v3657_v25 }
 0x54f   : > { %5462 = vmatpush1.msk.msra.mxu0 %vm286_vm5, %v3656_v4  ;;  %v3643_v24 = vpop.permute.xlu1 %3642 }
 0x550   : > { %v3645_v56 = vpop.permute.xlu0 %3644  ;;  %v3654_v57 = vsel %vm269_vm6, %v3641_v37, %v3643_v24 }
 0x551   : > { %5782 = vmatpush3.msra.mxu1 %v3645_v56  ;;  %v3655_v59 = vsel %vm269_vm6, %v3643_v24, %v3645_v56  ;;  %v4150_v24 = vld [vmem:[#allocation6 + $0xa8] sm:$0xff] }
 0x552   : > { %3701 = vmatprep.subr.mxu0 %v3655_v59  ;;  %5783 = vmatprep.subr.mxu1 %v6068_v1 }
 0x553   : > { %3702 = vmatpush1.msra.mxu0 %v3654_v57  ;;  %5784 = vmatpush3.msra.mxu1 %v7034_v30  ;;  %v3981_v5 = vpop.permute.xlu1 %3980 }
 0x554   : > { %3703 = vmatprep.subr.mxu0 %v3653_v6  ;;  %5788 = vmatprep.subr.mxu1 %v6068_v1  ;;  %v3983_v26 = vpop.permute.xlu0 %3982  ;;  %v4335_v6 = vld [vmem:[#allocation6 + $0xb0] sm:$0xff] }
 0x555   : > { %3704 = vmatpush1.msra.mxu0 %v7040_v21  ;;  %5786 = vmatmul.mubr.msk.f32.vlgmr.msra.gmra.mxu1 %vm282_vm7, %v3624_v45  ;;  %v5937_v21 = vld [vmem:[#allocation2 + $0x10] sm:$0xff] }
 0x556   : > { %5789 = vmatpush3.msk.msra.mxu1 %vm286_vm5, %v7144_v29  ;;  %5466 = vmatprep.subr.msk.mxu0 %vm286_vm5, %v7146_v28  ;;  %v3989_v29 = vsel %vm604_vm8, %v3981_v5, %v3983_v26 }
 0x557   : > { %5790 = vmatprep.subr.mxu1 %v6068_v1  ;;  %5463 = vmatmul.mubr.msk.f32.vlgmr.msra.gmra.mxu0 %vm282_vm7, %v3624_v45  ;;  %v3977_v30 = vpop.permute.xlu1 %3976 }
 0x558   : > { %5467 = vmatpush1.msk.msra.mxu0 %vm286_vm5, %v7102_v16  ;;  %5791 = vmatpush3.msra.mxu1 %v7152_v33  ;;  %v3975_v38 = vpop.permute.xlu0 %3974  ;;  %v5939_v16 = vld [vmem:[#allocation2] sm:$0xff] }
 0x559   : > { %3851 = vmatprep.subr.mxu0 %v7154_v34  ;;  %5792 = vmatprep.subr.mxu1 %v6068_v1  ;;  %v3987_v28 = vsel %vm604_vm8, %v3975_v38, %v3977_v30  ;;  %v3986_v37 = vsel %vm604_vm8, %v7232_v51, %v3975_v38 }
 0x55a   : > { %3852 = vmatpush1.msra.mxu0 %v7100_v15  ;;  %5793 = vmatpush3.msra.mxu1 %v5937_v21  ;;  %v3988_v15 = vsel %vm604_vm8, %v7230_v52, %v3981_v5  ;;  %v3965_v52 = vld [vmem:[#allocation6 + $0xa0] sm:$0xff]  ;;  %v4520_v21 = vld [vmem:[#allocation6 + $0xb8] sm:$0xff] }
 0x55b   : > { %3853 = vmatprep.subr.mxu0 %v5938_v62  ;;  %5794 = vmatprep.mubr.msk.f32.mxu1 %vm6071_vm4, %v6068_v1  ;;  %v4168_v7 = vpop.permute.xlu1 %4167 }
 0x55c   : > { %5797 = vmatprep.subr.mxu1 %v6068_v1  ;;  %3854 = vmatpush1.msra.mxu0 %v5939_v16  ;;  %v4166_v8 = vpop.permute.xlu0 %4165 }
 0x55d   : > { %5795 = vmatmul.mubr.msk.f32.vlgmr.msra.gmra.mxu1 %vm282_vm7, %v3622_v44  ;;  %3887 = vmatprep.mubr.f32.mxu0 %v6068_v1  ;;  %v4174_v2 = vsel %vm790_vm9, %v4166_v8, %v4168_v7  ;;  %v4173_v39 = vsel %vm790_vm9, %v7236_v48, %v4166_v8  ;;  %v4170_v48 = vsel %vm790_vm9, %v7050_v41, %v7082_v60  ;;  %v4705_v8 = vld [vmem:[#allocation6 + $0xc0] sm:$0xff] }
 0x55e   : > { %5798 = vmatpush3.msk.msra.mxu1 %vm286_vm5, %v3983_v26  ;;  %5471 = vmatprep.subr.msk.mxu0 %vm286_vm5, %v3989_v29  ;;  %v4725_v29 = vsel %vm1348_vm12, %v7098_v14, %v7220_v35 }
 0x55f   : > { %5799 = vmatprep.subr.mxu1 %v6068_v1  ;;  %5468 = vmatmul.mubr.msk.f32.vlgmr.msra.gmra.mxu0 %vm282_vm7, %v3622_v44  ;;  %v4160_v33 = vpop.permute.xlu1 %4159  ;;  %v4540_v44 = vsel %vm1162_vm11, %v7096_v27, %v7094_v13 }
 0x560   : > { %5472 = vmatpush1.msk.msra.mxu0 %vm286_vm5, %v3988_v15  ;;  %5800 = vmatpush3.msra.mxu1 %v3977_v30  ;;  %v4162_v34 = vpop.permute.xlu0 %4161  ;;  %v4171_v25 = vsel %vm790_vm9, %v7234_v61, %v4160_v33 }
 0x561   : > { %4033 = vmatprep.subr.mxu0 %v3987_v28  ;;  %5801 = vmatprep.subr.mxu1 %v6068_v1 }
 0x562   : > { %4034 = vmatpush1.msra.mxu0 %v3986_v37  ;;  %5802 = vmatpush3.msra.mxu1 %v7044_v17  ;;  %v4172_v17 = vsel %vm790_vm9, %v4160_v33, %v4162_v34  ;;  %v4910_v37 = vsel %vm1534_vm13, %v7224_v47, %v7222_v46 }
 0x563   : > { %4035 = vmatprep.subr.mxu0 %v3985_v12  ;;  %5803 = vmatprep.mubr.msk.f32.mxu1 %vm6071_vm4, %v6068_v1  ;;  %v4351_v51 = vpop.permute.xlu1 %4350 }
 0x564   : > { %5806 = vmatprep.subr.mxu1 %v6068_v1  ;;  %4036 = vmatpush1.msra.mxu0 %v7048_v40  ;;  %v4353_v55 = vpop.permute.xlu0 %4352 }
 0x565   : > { %4069 = vmatprep.mubr.f32.mxu0 %v6068_v1  ;;  %5804 = vmatmul.mubr.msk.f32.vlgmr.msra.gmra.mxu1 %vm282_vm7, %v3965_v52  ;;  %v4359_v57 = vsel %vm976_vm10, %v4351_v51, %v4353_v55 }
 0x566   : > { %5807 = vmatpush3.msk.msra.mxu1 %vm286_vm5, %v4168_v7  ;;  %5473 = vmatmul.mubr.msk.f32.vlgmr.msra.gmra.mxu0 %vm282_vm7, %v3965_v52 }
 0x567   : > { %5476 = vmatprep.subr.msk.mxu0 %vm286_vm5, %v4174_v2  ;;  %5808 = vmatprep.subr.mxu1 %v6068_v1  ;;  %v4347_v40 = vpop.permute.xlu1 %4346  ;;  %v5075_v2 = vld [vmem:[#allocation6 + $0xd0] sm:$0xff] }
 0x568   : > { %5477 = vmatpush1.msk.msra.mxu0 %vm286_vm5, %v4173_v39  ;;  %5809 = vmatpush3.msra.mxu1 %v4162_v34  ;;  %v4345_v4 = vpop.permute.xlu0 %4344  ;;  %v4890_v34 = vld [vmem:[#allocation6 + $0xc8] sm:$0xff] }
 0x569   : > { %4218 = vmatprep.subr.mxu0 %v4172_v17  ;;  %5810 = vmatprep.subr.mxu1 %v6068_v1  ;;  %v4357_v41 = vsel %vm976_vm10, %v4345_v4, %v4347_v40 }
 0x56a   : > { %4219 = vmatpush1.msra.mxu0 %v4171_v25  ;;  %5811 = vmatpush3.msra.mxu1 %v7082_v60  ;;  %v4358_v60 = vsel %vm976_vm10, %v7238_v58, %v4351_v51  ;;  %v4355_v58 = vsel %vm976_vm10, %v7084_v43, %v7086_v3 }
 0x56b   : > { %4220 = vmatprep.subr.mxu0 %v4170_v48  ;;  %5812 = vmatprep.mubr.msk.f32.mxu1 %vm6071_vm4, %v6068_v1  ;;  %v4538_v61 = vpop.permute.xlu1 %4537 }
 0x56c   : > { %5815 = vmatprep.subr.mxu1 %v6068_v1  ;;  %4221 = vmatpush1.msra.mxu0 %v7054_v42  ;;  %v4536_v56 = vpop.permute.xlu0 %4535  ;;  %v4356_v42 = vsel %vm976_vm10, %v7240_v50, %v4345_v4  ;;  %v4354_v50 = vsel %vm976_vm10, %v7027_v9, %v7084_v43 }
 0x56d   : > { %4254 = vmatprep.mubr.f32.mxu0 %v6068_v1  ;;  %5813 = vmatmul.mubr.msk.f32.vlgmr.msra.gmra.mxu1 %vm282_vm7, %v4150_v24  ;;  %v4544_v5 = vsel %vm1162_vm11, %v4536_v56, %v4538_v61  ;;  %v4543_v38 = vsel %vm1162_vm11, %v7244_v0, %v4536_v56 }
 0x56e   : > { %5816 = vmatpush3.msk.msra.mxu1 %vm286_vm5, %v4353_v55  ;;  %5478 = vmatmul.mubr.msk.f32.vlgmr.msra.gmra.mxu0 %vm282_vm7, %v4150_v24 }
 0x56f   : > { %5481 = vmatprep.subr.msk.mxu0 %vm286_vm5, %v4359_v57  ;;  %5817 = vmatprep.subr.mxu1 %v6068_v1  ;;  %v4530_v59 = vpop.permute.xlu1 %4529 }
 0x570   : > { %5482 = vmatpush1.msk.msra.mxu0 %vm286_vm5, %v4358_v60  ;;  %5818 = vmatpush3.msra.mxu1 %v4347_v40  ;;  %v4532_v45 = vpop.permute.xlu0 %4531  ;;  %v4541_v43 = vsel %vm1162_vm11, %v7242_v19, %v4530_v59 }
 0x571   : > { %4403 = vmatprep.subr.mxu0 %v4357_v41  ;;  %5819 = vmatprep.subr.mxu1 %v6068_v1  ;;  %v4542_v9 = vsel %vm1162_vm11, %v4530_v59, %v4532_v45 }
 0x572   : > { %4404 = vmatpush1.msra.mxu0 %v4356_v42  ;;  %5820 = vmatpush3.msra.mxu1 %v7086_v3 }
 0x573   : > { %5821 = vmatprep.mubr.msk.f32.mxu1 %vm6071_vm4, %v6068_v1  ;;  %4405 = vmatprep.subr.mxu0 %v4355_v58  ;;  %v4721_v26 = vpop.permute.xlu1 %4720 }
 0x574   : > { %5822 = vmatmul.mubr.msk.f32.vlgmr.msra.gmra.mxu1 %vm282_vm7, %v4335_v6  ;;  %5824 = vmatprep.subr.mxu1 %v6068_v1  ;;  %v4723_v30 = vpop.permute.xlu0 %4722  ;;  %v4728_v7 = vsel %vm1348_vm12, %v7246_v53, %v4721_v26 }
 0x575   : > { %4406 = vmatpush1.msra.mxu0 %v4354_v50  ;;  %4439 = vmatprep.mubr.f32.mxu0 %v6068_v1  ;;  %v4729_v19 = vsel %vm1348_vm12, %v4721_v26, %v4723_v30 }
 0x576   : > { %5825 = vmatpush3.msk.msra.mxu1 %vm286_vm5, %v4538_v61  ;;  %5483 = vmatmul.mubr.msk.f32.vlgmr.msra.gmra.mxu0 %vm282_vm7, %v4335_v6 }
 0x577   : > { %5486 = vmatprep.subr.msk.mxu0 %vm286_vm5, %v4544_v5  ;;  %5826 = vmatprep.subr.mxu1 %v6068_v1  ;;  %v4717_v3 = vpop.permute.xlu1 %4716 }
 0x578   : > { %5487 = vmatpush1.msk.msra.mxu0 %vm286_vm5, %v4543_v38  ;;  %5827 = vmatpush3.msra.mxu1 %v4532_v45  ;;  %v4715_v0 = vpop.permute.xlu0 %4714 }
 0x579   : > { %4588 = vmatprep.subr.mxu0 %v4542_v9  ;;  %5828 = vmatprep.subr.mxu1 %v6068_v1  ;;  %v4726_v27 = vsel %vm1348_vm12, %v7248_v23, %v4715_v0 }
 0x57a   : > { %4589 = vmatpush1.msra.mxu0 %v4541_v43  ;;  %5829 = vmatpush3.msra.mxu1 %v7094_v13  ;;  %v4727_v13 = vsel %vm1348_vm12, %v4715_v0, %v4717_v3 }
 0x57b   : > { %5830 = vmatprep.mubr.msk.f32.mxu1 %vm6071_vm4, %v6068_v1  ;;  %4590 = vmatprep.subr.mxu0 %v4540_v44  ;;  %v4908_v62 = vpop.permute.xlu1 %4907 }
 0x57c   : > { %5831 = vmatmul.mubr.msk.f32.vlgmr.msra.gmra.mxu1 %vm282_vm7, %v4520_v21  ;;  %5833 = vmatprep.subr.mxu1 %v6068_v1  ;;  %v4906_v16 = vpop.permute.xlu0 %4905 }
 0x57d   : > { %4591 = vmatpush1.msra.mxu0 %v7110_v32  ;;  %4624 = vmatprep.mubr.f32.mxu0 %v6068_v1  ;;  %v4914_v23 = vsel %vm1534_vm13, %v4906_v16, %v4908_v62  ;;  %v4913_v33 = vsel %vm1534_vm13, %v7252_v54, %v4906_v16 }
 0x57e   : > { %5834 = vmatpush3.msk.msra.mxu1 %vm286_vm5, %v4723_v30  ;;  %5488 = vmatmul.mubr.msk.f32.vlgmr.msra.gmra.mxu0 %vm282_vm7, %v4520_v21 }
 0x57f   : > { %5491 = vmatprep.subr.msk.mxu0 %vm286_vm5, %v4729_v19  ;;  %5835 = vmatprep.subr.mxu1 %v6068_v1  ;;  %v4900_v53 = vpop.permute.xlu1 %4899 }
 0x580   : > { %5492 = vmatpush1.msk.msra.mxu0 %vm286_vm5, %v4728_v7  ;;  %5836 = vmatpush3.msra.mxu1 %v4717_v3  ;;  %v4902_v32 = vpop.permute.xlu0 %4901 }
 0x581   : > { %4773 = vmatprep.subr.mxu0 %v4727_v13  ;;  %5837 = vmatprep.subr.mxu1 %v6068_v1  ;;  %v4912_v14 = vsel %vm1534_vm13, %v4900_v53, %v4902_v32 }
 0x582   : > { %4774 = vmatpush1.msra.mxu0 %v4726_v27  ;;  %5838 = vmatpush3.msra.mxu1 %v7220_v35  ;;  %v4911_v35 = vsel %vm1534_vm13, %v7250_v18, %v4900_v53  ;;  %v4909_v18 = vsel %vm1534_vm13, %v7228_v11, %v7224_v47 }
 0x583   : > { %5839 = vmatprep.mubr.msk.f32.mxu1 %vm6071_vm4, %v6068_v1  ;;  %4775 = vmatprep.subr.mxu0 %v4725_v29  ;;  %v5091_v15 = vpop.permute.xlu1 %5090 }
 0x584   : > { %5840 = vmatmul.mubr.msk.f32.vlgmr.msra.gmra.mxu1 %vm282_vm7, %v4705_v8  ;;  %5842 = vmatprep.subr.mxu1 %v6068_v1  ;;  %v5093_v28 = vpop.permute.xlu0 %5092  ;;  %v5098_v52 = vsel %vm1720_vm14, %v7254_v20, %v5091_v15 }
 0x585   : > { %4776 = vmatpush1.msra.mxu0 %v7114_v10  ;;  %4809 = vmatprep.mubr.f32.mxu0 %v6068_v1  ;;  %v5099_v12 = vsel %vm1720_vm14, %v5091_v15, %v5093_v28 }
 0x586   : > { %5843 = vmatpush3.msk.msra.mxu1 %vm286_vm5, %v4908_v62  ;;  %5493 = vmatmul.mubr.msk.f32.vlgmr.msra.gmra.mxu0 %vm282_vm7, %v4705_v8 }
 0x587   : > { %5496 = vmatprep.subr.msk.mxu0 %vm286_vm5, %v4914_v23  ;;  %5844 = vmatprep.subr.mxu1 %v6068_v1  ;;  %v5087_v54 = vpop.permute.xlu1 %5086 }
 0x588   : > { %5497 = vmatpush1.msk.msra.mxu0 %vm286_vm5, %v4913_v33  ;;  %5845 = vmatpush3.msra.mxu1 %v4902_v32  ;;  %v5085_v10 = vpop.permute.xlu0 %5084 }
 0x589   : > { %4958 = vmatprep.subr.mxu0 %v4912_v14  ;;  %5846 = vmatprep.subr.mxu1 %v6068_v1  ;;  %v5097_v51 = vsel %vm1720_vm14, %v5085_v10, %v5087_v54  ;;  %v5096_v11 = vsel %vm1720_vm14, %v7256_v63, %v5085_v10 }
 0x58a   : > { %4959 = vmatpush1.msra.mxu0 %v4911_v35  ;;  %5847 = vmatpush3.msra.mxu1 %v7222_v46 }
 0x58b   : > { %5848 = vmatprep.mubr.msk.f32.mxu1 %vm6071_vm4, %v6068_v1  ;;  %4960 = vmatprep.subr.mxu0 %v4910_v37  ;;  %v5077_v47 = vpop.permute.xlu1 %5076 }
 0x58c   : > { %5849 = vmatmul.mubr.msk.f32.vlgmr.msra.gmra.mxu1 %vm282_vm7, %v4890_v34  ;;  %5851 = vmatprep.subr.mxu1 %v6068_v1  ;;  %v5081_v46 = vpop.permute.xlu0 %5080  ;;  %v5094_v55 = vsel %vm1720_vm14, %v5077_v47, %v7226_v49 }
 0x58d   : > { %4961 = vmatpush1.msra.mxu0 %v4909_v18  ;;  %4994 = vmatprep.mubr.f32.mxu0 %v6068_v1  ;;  %v5095_v20 = vsel %vm1720_vm14, %v7226_v49, %v5081_v46 }
 0x58e   : > { %5852 = vmatpush3.msk.msra.mxu1 %vm286_vm5, %v5093_v28  ;;  %5498 = vmatmul.mubr.msk.f32.vlgmr.msra.gmra.mxu0 %vm282_vm7, %v4890_v34 }
 0x58f   : > { %5501 = vmatprep.subr.msk.mxu0 %vm286_vm5, %v5099_v12  ;;  %5853 = vmatprep.subr.mxu1 %v6068_v1 }
 0x590   : > { %5502 = vmatpush1.msk.msra.mxu0 %vm286_vm5, %v5098_v52  ;;  %5854 = vmatpush3.msra.mxu1 %v5087_v54 }
 0x591   : > { %5143 = vmatprep.subr.mxu0 %v5097_v51  ;;  %5855 = vmatprep.subr.mxu1 %v6068_v1 }
 0x592   : > { %5144 = vmatpush1.msra.mxu0 %v5096_v11  ;;  %5856 = vmatpush3.msra.mxu1 %v5081_v46 }
 0x593   : > { %5857 = vmatprep.mubr.msk.f32.mxu1 %vm6071_vm4, %v6068_v1  ;;  %5145 = vmatprep.subr.mxu0 %v5095_v20  ;;  %vm5267_vm4 = vcmask 261120  }
 0x594   : > { %5858 = vmatmul.mubr.msk.f32.vlgmr.msra.gmra.mxu1 %vm282_vm7, %v5075_v2  ;;  %5146 = vmatpush1.msra.mxu0 %v5094_v55 }
 0x595   : > { %5179 = vmatprep.mubr.f32.mxu0 %v6068_v1 }
 0x596   : > { %5503 = vmatmul.mubr.msk.f32.vlgmr.msra.gmra.mxu0 %vm282_vm7, %v5075_v2 }
 0x615   : > { %v3810_v63 = vpop.f32.mrf.mxu1 }
 0x617   : > { %v5787_v39 = vpop.f32.mrf.mxu1  ;;  %v3739_v40 = vpop.f32.mrf.mxu0 }
 0x619   : > { %v3741_v25 = vpop.f32.mrf.mxu0 }
 0x61d   : > { %v3960_v17 = vpop.f32.mrf.mxu1 }
 0x61e   : > { %v3961_v26 = vadd.f32 %v3960_v17, %v3810_v63 }
 0x61f   : > { %v5796_v49 = vpop.f32.mrf.mxu1  ;;  %v3889_v24 = vpop.f32.mrf.mxu0 }
 0x620   : > { %v3890_v43 = vadd.f32 %v3889_v24, %v3739_v40 }
 0x621   : > { %v3891_v56 = vpop.f32.mrf.mxu0 }
 0x622   : > { %v3892_v21 = vadd.f32 %v3891_v56, %v3741_v25 }
 0x625   : > { %v4142_v4 = vpop.f32.mrf.mxu1 }
 0x626   : > { %v4071_v41 = vpop.f32.mrf.mxu0  ;;  %v4148_v3 = vadd.f32 %v4142_v4, %v3961_v26 }
 0x627   : > { %v5805_v48 = vpop.f32.mrf.mxu1  ;;  %v4146_v19 = vadd.f32 %v4071_v41, %v3890_v43 }
 0x628   : > { %v4073_v42 = vpop.f32.mrf.mxu0 }
 0x629   : > { %v4147_v7 = vadd.f32 %v4073_v42, %v3892_v21 }
 0x62d   : > { %v4327_v61 = vpop.f32.mrf.mxu1 }
 0x62e   : > { %v4256_v45 = vpop.f32.mrf.mxu0  ;;  %v4333_v62 = vadd.f32 %v4327_v61, %v4148_v3 }
 0x62f   : > { %v5814_v57 = vpop.f32.mrf.mxu1  ;;  %v4331_v13 = vadd.f32 %v4256_v45, %v4146_v19 }
 0x630   : > { %v4258_v1 = vpop.f32.mrf.mxu0 }
 0x631   : > { %v4332_v8 = vadd.f32 %v4258_v1, %v4147_v7 }
 0x634   : > { %v4512_v60 = vpop.f32.mrf.mxu1 }
 0x635   : > { %v4518_v27 = vadd.f32 %v4512_v60, %v4333_v62 }
 0x636   : > { %v5823_v59 = vpop.f32.mrf.mxu1  ;;  %v4441_v58 = vpop.f32.mrf.mxu0 }
 0x637   : > { %v4516_v29 = vadd.f32 %v4441_v58, %v4331_v13 }
 0x638   : > { %v4443_v5 = vpop.f32.mrf.mxu0 }
 0x639   : > { %v4517_v28 = vadd.f32 %v4443_v5, %v4332_v8 }
 0x63c   : > { %v4697_v6 = vpop.f32.mrf.mxu1 }
 0x63d   : > { %v4703_v23 = vadd.f32 %v4697_v6, %v4518_v27 }
 0x63e   : > { %v5832_v50 = vpop.f32.mrf.mxu1  ;;  %v4626_v30 = vpop.f32.mrf.mxu0 }
 0x63f   : > { %v4701_v33 = vadd.f32 %v4626_v30, %v4516_v29 }
 0x640   : > { %v4628_v0 = vpop.f32.mrf.mxu0 }
 0x641   : > { %v4702_v35 = vadd.f32 %v4628_v0, %v4517_v28 }
 0x644   : > { %v4882_v38 = vpop.f32.mrf.mxu1 }
 0x645   : > { %v4888_v14 = vadd.f32 %v4882_v38, %v4703_v23 }
 0x646   : > { %v5841_v9 = vpop.f32.mrf.mxu1  ;;  %v4811_v44 = vpop.f32.mrf.mxu0 }
 0x647   : > { %v4886_v54 = vadd.f32 %v4811_v44, %v4701_v33 }
 0x648   : > { %v4813_v53 = vpop.f32.mrf.mxu0 }
 0x649   : > { %v4887_v18 = vadd.f32 %v4813_v53, %v4702_v35 }
 0x64c   : > { %v5067_v16 = vpop.f32.mrf.mxu1 }
 0x64d   : > { %v5073_v10 = vadd.f32 %v5067_v16, %v4888_v14 }
 0x64e   : > { %v5850_v32 = vpop.f32.mrf.mxu1  ;;  %v4996_v15 = vpop.f32.mrf.mxu0 }
 0x64f   : > { %v5071_v12 = vadd.f32 %v4996_v15, %v4886_v54 }
 0x650   : > { %v4998_v34 = vpop.f32.mrf.mxu0 }
 0x651   : > { %v5072_v47 = vadd.f32 %v4998_v34, %v4887_v18 }
 0x654   : > { %v5252_v37 = vpop.f32.mrf.mxu1 }
 0x655   : > { %v5258_v52 = vadd.f32 %v5252_v37, %v5073_v10 }
 0x656   : > { %v5181_v46 = vpop.f32.mrf.mxu0  ;;  %v5859_v51 = vpop.f32.mrf.mxu1 }
 0x657   : > { %v5261_v11 = vmax.f32 %v5258_v52, 0.0  ;;  %v5256_v20 = vadd.f32 %v5181_v46, %v5071_v12 }
 0x658   : > { %v5183_v55 = vpop.f32.mrf.mxu0 }
 0x659   : > { %v5264_v2 = vmul.f32 %v5261_v11, %v6592_v22  ;;  %v5259_v63 = vmax.f32 %v5256_v20, 0.0  ;;  %v5257_v39 = vadd.f32 %v5183_v55, %v5072_v47 }
 0x65b   : > { %5268 = vst.msk [vmem:[%s201_s11 + $0x10] sm:$0xff] %vm5267_vm4, %v5264_v2  ;;  %v5262_v17 = vmul.f32 %v5259_v63, %v6594_v31  ;;  %v5260_v49 = vmax.f32 %v5257_v39, 0.0 }
 0x65d   : > { %5265 = vst [vmem:[%s201_s11] sm:$0xff] %v5262_v17  ;;  %v5263_v40 = vmul.f32 %v5260_v49, %v6597_v36 }
 0x65f   : > { %5266 = vst [vmem:[%s201_s11 + $0x8] sm:$0xff] %v5263_v40 }
 0x660   : > { %6007 = shalt.err (!%p6004_p0)
}
 0x661   : > { %s6008_s25 = scalar_lea.hbm %s5282_s18, 384  ;;  %s6012_s29 = scalar_lea.hbm %s7490_s3, 768 }
 0x662   : > { %p6009_p11 = scmp.ne.s32.totalorder %s5282_s18, %s6008_s25  ;;  %p6013_p1 = scmp.lt.s32.totalorder %s5282_s18, %s7490_s3 }
 0x663   : > { %p6014_p4 = scmp.lt.s32.totalorder %s6012_s29, %s6008_s25 }
 0x664   : > { %p6010_p9 = pnand %p6009_p11, %p7506_p3 }
 0x665   : > { %p6015_p6 = por %p6014_p4, %p6013_p1 }
 0x666   : > { %p6011_p12 = pneg %p6010_p9 }
 0x668   : > { %p6016_p8 = pnand %p6015_p6, %p6011_p12 }
 0x66a   : > { %6019 = shalt.err (!%p6016_p8)
}
 0x66b   : > { %5871 = dma.vmem_to_hbm [thread:$0]  (%p7506_p3), %s5285_s22, 384, %s5282_s18, %s5270_s20  }
 0x66c PF: > { %s5296_s8 = sand.u32 1, %s6050_s12   ;;  %p7507_p5 = scmp.ne.s32.totalorder %s7496_s19, 0 }
 0x66d   : > { %p7508_p7 = scmp.ge.s32.totalorder %s6062_s15, 2  ;;  %s5297_s7 = scalar_lea.sflag [#allocation5], %s5296_s8 }
 0x66f   : > { %p5882_p10 = pnand %p7508_p7, %p7507_p5 }
 0x671   : > { %p5883_p2 = pneg %p5882_p10 }
 0x673   : > { %6045 = dma.done.wait (%p5883_p2), %s5297_s7, 384  }
 0x674   : > { %6047 = vsyncadd (%p5883_p2), %s5297_s7, 4294966912  ;;  %p17_p13 = scmp.ge.s32.totalorder %s6155_s24, 4   ;;  %s7509_s12 = smov %s6054_s13 }
 0x675   : > { %s7510_s13 = smov %s6058_s14  ;;  %s7511_s14 = smov %s6172_s5 }
 0x676   : > { %s7512_s15 = smov %s6155_s24  ;;  %19 = sbr.rel (!%p17_p13) target bundleno = 6 (0x6), region = 108 }
 0x67b   :  { %5302 = vsyncpa [#allocation4], 1 }
 0x67c   :  { %5304 = vsyncpa [#allocation4 + $0x1], 1 }
 0x67d   :  { %5305 = vsyncpa [#allocation7], 1 }
 0x67e   :  { %5306 = vsyncpa [#allocation5], 1 }
 0x67f   :  { %5308 = vsyncpa [#allocation5 + $0x1], 1 }

</bundles_post_ra>
